<compile_context>
chip_gen: v7x
topology: tpu7x:2x2x1
jax: 0.10.0
libtpu: 0.0.40
codegen_flags: <defaults>
</compile_context>

<pallas_src>
import functools

import jax
import jax.numpy as jnp
import numpy as np
from jax.experimental import pallas as pl
from jax.experimental.pallas import tpu as pltpu


def _vmem_limit_bytes():
    """Per-generation VMEM budget: capacity minus headroom, capped at 100 MiB."""
    try:
        cap = int(pltpu.get_tpu_info().vmem_capacity_bytes)
    except Exception:
        return None  # let the compiler use its default scoped limit
    return max(32 * 1024 * 1024, min(cap - 16 * 1024 * 1024, 100 * 1024 * 1024))


def encoder_layer_kernel(x_ref, bias_ref,
                         wq_ref, bq_ref, wk_ref, bk_ref, wv_ref, bv_ref,
                         wo_ref, bo_ref, g1_ref, be1_ref,
                         w1_ref, b1_ref, w2_ref, b2_ref, g2_ref, be2_ref,
                         out_ref, *prob_out,
                         n_head, d_head, scale, eps, q_tile,
                         compute_dtype, exp_dtype):
    prob_ref = prob_out[0] if prob_out else None
    S = x_ref.shape[1]
    H, dh = n_head, d_head
    num_qt = S // q_tile

    # ---- full-sequence K / V projections (once per batch item) -------------
    x_full = x_ref[0]                                    # (S, D)
    xc_full = x_full.astype(compute_dtype)

    def proj_full(w_ref, b_ref):
        return (jnp.dot(xc_full, w_ref[...].astype(compute_dtype),
                        preferred_element_type=jnp.float32)
                + b_ref[...])                            # (S, H*dh), f32

    def to_heads(t, rows):
        # (rows, H*dh) -> (H, rows, dh).  (einshape would avoid the XLU copy.)
        return jnp.transpose(t.reshape(rows, H, dh), (1, 0, 2)).astype(compute_dtype)

    kh = to_heads(proj_full(wk_ref, bk_ref), S)          # (H, S, dh)
    vh = to_heads(proj_full(wv_ref, bv_ref), S)          # (H, S, dh)

    # ---- invariant operands loaded once (outside the query-tile loop) ------
    wq = wq_ref[...].astype(compute_dtype); bq = bq_ref[...]
    wo = wo_ref[...].astype(compute_dtype); bo = bo_ref[...]
    w1 = w1_ref[...].astype(compute_dtype); b1 = b1_ref[...]
    w2 = w2_ref[...].astype(compute_dtype); b2 = b2_ref[...]
    g1 = g1_ref[...]; be1 = be1_ref[...]
    g2 = g2_ref[...]; be2 = be2_ref[...]

    def layer_norm(t, g, b):
        # biased variance + eps inside rsqrt == torch.nn.LayerNorm
        mu = jnp.mean(t, axis=-1, keepdims=True)
        var = jnp.mean((t - mu) ** 2, axis=-1, keepdims=True)
        return (t - mu) * jax.lax.rsqrt(var + eps) * g + b

    # ---- per-query-tile attention + residual/LN + FFN + residual/LN --------
    def process_tile(qt):
        start = qt * q_tile
        if not isinstance(start, int):
            start = pl.multiple_of(start, q_tile)

        x_t = x_ref[0, pl.ds(start, q_tile), :]          # (tq, D)
        x_t32 = x_t.astype(jnp.float32)

        # Q projection for this tile only (softmax scale folded into Q).
        q_t = (jnp.dot(x_t.astype(compute_dtype), wq,
                       preferred_element_type=jnp.float32) + bq) * scale
        qh = to_heads(q_t, q_tile)                       # (H, tq, dh)

        # Batched QK^T over all heads (MXU), f32 accumulation, additive mask.
        scores = jnp.einsum('hqd,hkd->hqk', qh, kh,
                            preferred_element_type=jnp.float32)   # (H, tq, S)
        bias = bias_ref[0, pl.ds(start, q_tile), :].astype(jnp.float32)
        scores = scores + bias                            # broadcast over heads

        # f32 max/sum reductions; exp optionally in bf16 (v6e/v7x EUP).
        m = jnp.max(scores, axis=-1, keepdims=True)
        e = jnp.exp((scores - m).astype(exp_dtype)).astype(jnp.float32)
        denom = jnp.sum(e, axis=-1, keepdims=True)
        p = e * pl.reciprocal(denom, approx=True)         # EUP reciprocal

        if prob_ref is not None:
            prob_ref[0, :, pl.ds(start, q_tile), :] = p.astype(prob_ref.dtype)

        # Batched PV over all heads (MXU); fold heads back into features.
        ctx = jnp.einsum('hqk,hkd->hqd', p.astype(compute_dtype), vh,
                         preferred_element_type=jnp.float32)      # (H, tq, dh)
        ctx = jnp.transpose(ctx, (1, 0, 2)).reshape(q_tile, H * dh)

        attn = (jnp.dot(ctx.astype(compute_dtype), wo,
                        preferred_element_type=jnp.float32) + bo)

        # residual + LayerNorm 1 (f32)
        y = layer_norm(attn + x_t32, g1, be1)

        # position-wise FFN: linear -> relu -> linear (bf16 MXU, f32 acc)
        h1 = (jnp.dot(y.astype(compute_dtype), w1,
                      preferred_element_type=jnp.float32) + b1)
        h1 = jnp.maximum(h1, 0.0)
        h2 = (jnp.dot(h1.astype(compute_dtype), w2,
                      preferred_element_type=jnp.float32) + b2)

        # residual + LayerNorm 2 (f32)
        z = layer_norm(h2 + y, g2, be2)
        out_ref[0, pl.ds(start, q_tile), :] = z.astype(out_ref.dtype)

    if num_qt == 1:
        process_tile(0)
    else:
        pl.loop(0, num_qt)(process_tile)


def encoder_layer(x, mask, params, *, n_head, d_head, eps,
                  compute_dtype=jnp.bfloat16,     # MXU operand dtype (f32 acc kept)
                  q_tile=None,                    # query-tile rows (bounds VMEM)
                  return_prob=True,               # skip prob writeback if False
                  prob_dtype=jnp.float32,         # bf16 halves the dominant HBM stream
                  exp_dtype=jnp.float32):         # bf16 on v6e/v7x, f32 on v5e
    B, S, D = x.shape
    H = n_head
    d_model = H * d_head
    d_ff = params["w1"].shape[1]

    if q_tile is None:
        q_tile = min(S, 256)
    assert S % q_tile == 0, "sequence length must be a multiple of q_tile"

    # Additive mask bias precomputed wrapper-side in bf16 (0 keep / -1e9 masked).
    # In f32 arithmetic, score + (-1e9) == -1e9 for |score| << 1e9, matching
    # masked_fill_; exp() of it underflows to exactly 0.
    mask_bias = jnp.where(jnp.asarray(mask) != 0,
                          jnp.float32(-1e9), jnp.float32(0.0)).astype(jnp.bfloat16)

    # Weights shipped in the MXU compute dtype (halves DMA + VMEM for bf16);
    # biases / LN params stay f32 (added post f32 accumulation).
    cast_w = lambda w: w.astype(compute_dtype)
    f32 = lambda t: t.astype(jnp.float32)
    wq, wk, wv = cast_w(params["wq"]), cast_w(params["wk"]), cast_w(params["wv"])
    wo, w1, w2 = cast_w(params["wo"]), cast_w(params["w1"]), cast_w(params["w2"])
    bq, bk, bv = f32(params["bq"]), f32(params["bk"]), f32(params["bv"])
    bo, b1, b2 = f32(params["bo"]), f32(params["b1"]), f32(params["b2"])
    g1, be1 = f32(params["g1"]), f32(params["be1"])
    g2, be2 = f32(params["g2"]), f32(params["be2"])

    # Invariant operands: constant index map + single buffering (Buffered(1)) —
    # re-fetch never happens, so the second pipeline buffer is pure VMEM waste.
    def wspec(shape):
        nd = len(shape)
        return pl.BlockSpec(shape, lambda b, _nd=nd: (0,) * _nd,
                            pipeline_mode=pl.Buffered(1))

    in_specs = [
        pl.BlockSpec((1, S, D), lambda b: (b, 0, 0)),     # activations
        pl.BlockSpec((1, S, S), lambda b: (b, 0, 0)),     # additive mask bias (bf16)
        wspec((D, d_model)), wspec((1, d_model)),         # W_Q, b_Q
        wspec((D, d_model)), wspec((1, d_model)),         # W_K, b_K
        wspec((D, d_model)), wspec((1, d_model)),         # W_V, b_V
        wspec((d_model, D)), wspec((1, D)),               # W_O, b_O
        wspec((1, D)), wspec((1, D)),                     # ln1 gamma, beta
        wspec((D, d_ff)), wspec((1, d_ff)),               # ffn W1, b1
        wspec((d_ff, D)), wspec((1, D)),                  # ffn W2, b2
        wspec((1, D)), wspec((1, D)),                     # ln2 gamma, beta
    ]

    out_shapes = [jax.ShapeDtypeStruct((B, S, D), x.dtype)]
    out_specs = [pl.BlockSpec((1, S, D), lambda b: (b, 0, 0))]
    if return_prob:
        out_shapes.append(jax.ShapeDtypeStruct((B, H, S, S), prob_dtype))
        out_specs.append(pl.BlockSpec((1, H, S, S), lambda b: (b, 0, 0, 0)))

    operands = (x, mask_bias, wq, bq, wk, bk, wv, bv, wo, bo,
                g1, be1, w1, b1, w2, b2, g2, be2)

    # Advisory cost estimate so XLA schedules surrounding ops around this call.
    flops = B * (2 * S * D * d_model * 4        # QKV + output projections
                 + 2 * S * D * d_ff * 2         # FFN
                 + 2 * H * S * S * d_head * 2)  # QK^T + PV
    bytes_accessed = sum(int(a.size) * a.dtype.itemsize for a in operands)
    bytes_accessed += B * S * D * x.dtype.itemsize
    if return_prob:
        bytes_accessed += B * H * S * S * np.dtype(prob_dtype).itemsize
    cost = pl.CostEstimate(flops=int(flops),
                           transcendentals=int(B * H * S * S),
                           bytes_accessed=int(bytes_accessed))

    kernel = functools.partial(
        encoder_layer_kernel,
        n_head=n_head, d_head=d_head, scale=1.0 / (d_head ** 0.5),
        eps=eps, q_tile=q_tile,
        compute_dtype=compute_dtype, exp_dtype=exp_dtype)

    results = pl.pallas_call(
        kernel,
        out_shape=tuple(out_shapes),
        grid_spec=pltpu.PrefetchScalarGridSpec(
            num_scalar_prefetch=0,
            grid=(B,),                                     # batch items independent
            in_specs=in_specs,
            out_specs=out_specs),
        compiler_params=pltpu.CompilerParams(
            dimension_semantics=("parallel",),             # v7x: shard batch over TCs
            vmem_limit_bytes=_vmem_limit_bytes()),
        cost_estimate=cost,
    )(*operands)

    if return_prob:
        out, prob = results
        return out, prob
    return results[0], None


def reference(x, mask, params, *, n_head, d_head, eps):
    """Pure-JAX reference of the PyTorch forward (dropout p=0)."""
    B, S, D = x.shape
    scale = 1.0 / (d_head ** 0.5)

    def proj(w, b):
        return x @ w + b

    q = proj(params["wq"], params["bq"]).reshape(B, S, n_head, d_head).transpose(0, 2, 1, 3)
    k = proj(params["wk"], params["bk"]).reshape(B, S, n_head, d_head).transpose(0, 2, 1, 3)
    v = proj(params["wv"], params["bv"]).reshape(B, S, n_head, d_head).transpose(0, 2, 1, 3)

    scores = jnp.einsum("bhqd,bhkd->bhqk", q, k) * scale
    scores = jnp.where(mask[:, None, :, :] != 0, -1000000000.0, scores)
    prob = jax.nn.softmax(scores, axis=-1)
    ctx = jnp.einsum("bhqk,bhkd->bhqd", prob, v).transpose(0, 2, 1, 3).reshape(B, S, -1)
    attn_out = ctx @ params["wo"] + params["bo"]

    def ln(t, g, b):
        mu = jnp.mean(t, axis=-1, keepdims=True)
        var = jnp.mean((t - mu) ** 2, axis=-1, keepdims=True)
        return (t - mu) / jnp.sqrt(var + eps) * g + b

    y = ln(attn_out + x, params["g1"], params["be1"])
    h = jnp.maximum(y @ params["w1"] + params["b1"], 0.0)
    z = ln(h @ params["w2"] + params["b2"] + y, params["g2"], params["be2"])
    return z, prob


if __name__ == "__main__":
    # small shapes consistent with the module; S=16 / q_tile=8 exercises the
    # in-kernel query-tile loop (2 tiles per batch item).
    B, S = 2, 16
    d_hidn, n_head, d_head, d_ff = 32, 4, 8, 64
    eps = 1e-12      # config.layer_norm_epsilon
    q_tile = 8
    # config.dropout = 0.0 -> dropout is an exact identity
    # TODO(synk): training-mode dropout (p>0) is not implemented in the kernel.

    key = jax.random.PRNGKey(0)
    keys = jax.random.split(key, 12)
    init = lambda k, shape, s=0.05: (s * jax.random.normal(k, shape)).astype(jnp.float32)

    params = {
        "wq": init(keys[0], (d_hidn, n_head * d_head)),
        "bq": init(keys[1], (1, n_head * d_head)),
        "wk": init(keys[2], (d_hidn, n_head * d_head)),
        "bk": init(keys[3], (1, n_head * d_head)),
        "wv": init(keys[4], (d_hidn, n_head * d_head)),
        "bv": init(keys[5], (1, n_head * d_head)),
        "wo": init(keys[6], (n_head * d_head, d_hidn)),
        "bo": init(keys[7], (1, d_hidn)),
        "g1": jnp.ones((1, d_hidn), jnp.float32),
        "be1": jnp.zeros((1, d_hidn), jnp.float32),
        "w1": init(keys[8], (d_hidn, d_ff)),
        "b1": init(keys[9], (1, d_ff)),
        "w2": init(keys[10], (d_ff, d_hidn)),
        "b2": init(keys[11], (1, d_hidn)),
        "g2": jnp.ones((1, d_hidn), jnp.float32),
        "be2": jnp.zeros((1, d_hidn), jnp.float32),
    }

    x = jax.random.normal(jax.random.PRNGKey(42), (B, S, d_hidn), jnp.float32)
    # pad mask: last 3 key positions of batch item 1 are masked (1.0 == masked)
    mask = jnp.zeros((B, S, S), jnp.float32)
    mask = mask.at[1, :, S - 3:].set(1.0)

    ref_out, ref_prob = reference(x, mask, params, n_head=n_head, d_head=d_head, eps=eps)

    # 1) exact-parity path: f32 MXU operands, f32 probability output.
    out, prob = encoder_layer(x, mask, params, n_head=n_head, d_head=d_head,
                              eps=eps, compute_dtype=jnp.float32, q_tile=q_tile)
    out = jax.block_until_ready(out)
    prob = jax.block_until_ready(prob)
    assert out.shape == (B, S, d_hidn) and prob.shape == (B, n_head, S, S)
    # tolerances account for the EUP approximate-reciprocal softmax normalization
    assert jnp.allclose(out, ref_out, atol=2e-3, rtol=2e-3)
    assert jnp.allclose(prob, ref_prob, atol=2e-3, rtol=2e-3)

    # 2) production path: bf16 MXU operands + bf16 probability writeback
    #    (f32 accumulation, f32 residual/softmax/LayerNorm). Looser tolerance
    #    reflects bf16 operand rounding.
    out_bf, prob_bf = encoder_layer(x, mask, params, n_head=n_head, d_head=d_head,
                                    eps=eps, compute_dtype=jnp.bfloat16,
                                    q_tile=q_tile, prob_dtype=jnp.bfloat16)
    out_bf = jax.block_until_ready(out_bf)
    prob_bf = jax.block_until_ready(prob_bf)
    assert jnp.allclose(out_bf.astype(jnp.float32), ref_out, atol=6e-2, rtol=6e-2)
    assert jnp.allclose(prob_bf.astype(jnp.float32), ref_prob, atol=2e-2, rtol=2e-2)

    print("KERNEL_OK")
</pallas_src>

<mosaic_0001>
module attributes {stable_mosaic.version = 11 : i64} {
  func.func @encoder_layer_kernel(%arg0: i32, %arg1: memref<1x16x32xf32, #tpu.memory_space<vmem>>, %arg2: memref<1x16x16xbf16, #tpu.memory_space<vmem>>, %arg3: memref<32x32xf32, #tpu.memory_space<vmem>>, %arg4: memref<1x32xf32, #tpu.memory_space<vmem>>, %arg5: memref<32x32xf32, #tpu.memory_space<vmem>>, %arg6: memref<1x32xf32, #tpu.memory_space<vmem>>, %arg7: memref<32x32xf32, #tpu.memory_space<vmem>>, %arg8: memref<1x32xf32, #tpu.memory_space<vmem>>, %arg9: memref<32x32xf32, #tpu.memory_space<vmem>>, %arg10: memref<1x32xf32, #tpu.memory_space<vmem>>, %arg11: memref<1x32xf32, #tpu.memory_space<vmem>>, %arg12: memref<1x32xf32, #tpu.memory_space<vmem>>, %arg13: memref<32x64xf32, #tpu.memory_space<vmem>>, %arg14: memref<1x64xf32, #tpu.memory_space<vmem>>, %arg15: memref<64x32xf32, #tpu.memory_space<vmem>>, %arg16: memref<1x32xf32, #tpu.memory_space<vmem>>, %arg17: memref<1x32xf32, #tpu.memory_space<vmem>>, %arg18: memref<1x32xf32, #tpu.memory_space<vmem>>, %arg19: memref<1x16x32xf32, #tpu.memory_space<vmem>>, %arg20: memref<1x4x16x16xf32, #tpu.memory_space<vmem>>) attributes {dimension_semantics = [#tpu.dimension_semantics<parallel>], iteration_bounds = array<i64: 2>, scalar_prefetch = 0 : i64, scratch_operands = 0 : i64, tpu.core_type = #tpu.core_type<tc>, window_params = [{transform_indices = @transform_0, window_bounds = array<i64: 1, 16, 32>}, {transform_indices = @transform_1, window_bounds = array<i64: 1, 16, 16>}, {pipeline_mode = #tpu.pipeline_mode<synchronous>, transform_indices = @transform_2, window_bounds = array<i64: 32, 32>}, {pipeline_mode = #tpu.pipeline_mode<synchronous>, transform_indices = @transform_3, window_bounds = array<i64: 1, 32>}, {pipeline_mode = #tpu.pipeline_mode<synchronous>, transform_indices = @transform_4, window_bounds = array<i64: 32, 32>}, {pipeline_mode = #tpu.pipeline_mode<synchronous>, transform_indices = @transform_5, window_bounds = array<i64: 1, 32>}, {pipeline_mode = #tpu.pipeline_mode<synchronous>, transform_indices = @transform_6, window_bounds = array<i64: 32, 32>}, {pipeline_mode = #tpu.pipeline_mode<synchronous>, transform_indices = @transform_7, window_bounds = array<i64: 1, 32>}, {pipeline_mode = #tpu.pipeline_mode<synchronous>, transform_indices = @transform_8, window_bounds = array<i64: 32, 32>}, {pipeline_mode = #tpu.pipeline_mode<synchronous>, transform_indices = @transform_9, window_bounds = array<i64: 1, 32>}, {pipeline_mode = #tpu.pipeline_mode<synchronous>, transform_indices = @transform_10, window_bounds = array<i64: 1, 32>}, {pipeline_mode = #tpu.pipeline_mode<synchronous>, transform_indices = @transform_11, window_bounds = array<i64: 1, 32>}, {pipeline_mode = #tpu.pipeline_mode<synchronous>, transform_indices = @transform_12, window_bounds = array<i64: 32, 64>}, {pipeline_mode = #tpu.pipeline_mode<synchronous>, transform_indices = @transform_13, window_bounds = array<i64: 1, 64>}, {pipeline_mode = #tpu.pipeline_mode<synchronous>, transform_indices = @transform_14, window_bounds = array<i64: 64, 32>}, {pipeline_mode = #tpu.pipeline_mode<synchronous>, transform_indices = @transform_15, window_bounds = array<i64: 1, 32>}, {pipeline_mode = #tpu.pipeline_mode<synchronous>, transform_indices = @transform_16, window_bounds = array<i64: 1, 32>}, {pipeline_mode = #tpu.pipeline_mode<synchronous>, transform_indices = @transform_17, window_bounds = array<i64: 1, 32>}, {transform_indices = @transform_18, window_bounds = array<i64: 1, 16, 32>}, {transform_indices = @transform_19, window_bounds = array<i64: 1, 4, 16, 16>}]} {
    %c0 = arith.constant 0 : index
    %c0_0 = arith.constant 0 : index
    %c0_1 = arith.constant 0 : index
    %0 = vector.load %arg1[%c0, %c0_0, %c0_1] : memref<1x16x32xf32, #tpu.memory_space<vmem>>, vector<1x16x32xf32>
    %1 = vector.shape_cast %0 : vector<1x16x32xf32> to vector<16x32xf32>
    %c0_2 = arith.constant 0 : index
    %c0_3 = arith.constant 0 : index
    %2 = vector.load %arg5[%c0_2, %c0_3] : memref<32x32xf32, #tpu.memory_space<vmem>>, vector<32x32xf32>
    %cst = arith.constant dense<0.000000e+00> : vector<16x32xf32>
    %3 = tpu.matmul %1, %2, %cst {dimension_numbers = #tpu.dot_dimension_numbers<[1], [0], [0], [1], [0, 0, 1, 1], [], []>} : vector<16x32xf32>, vector<32x32xf32>, vector<16x32xf32> -> vector<16x32xf32>
    %c0_4 = arith.constant 0 : index
    %c0_5 = arith.constant 0 : index
    %4 = vector.load %arg6[%c0_4, %c0_5] : memref<1x32xf32, #tpu.memory_space<vmem>>, vector<1x32xf32>
    %5 = vector.broadcast %4 : vector<1x32xf32> to vector<16x32xf32>
    %6 = arith.addf %3, %5 : vector<16x32xf32>
    %7 = vector.shape_cast %6 : vector<16x32xf32> to vector<16x4x8xf32>
    %8 = tpu.transpose %7, [1, 0, 2] : vector<16x4x8xf32> -> vector<4x16x8xf32>
    %c0_6 = arith.constant 0 : index
    %c0_7 = arith.constant 0 : index
    %9 = vector.load %arg7[%c0_6, %c0_7] : memref<32x32xf32, #tpu.memory_space<vmem>>, vector<32x32xf32>
    %cst_8 = arith.constant dense<0.000000e+00> : vector<16x32xf32>
    %10 = tpu.matmul %1, %9, %cst_8 {dimension_numbers = #tpu.dot_dimension_numbers<[1], [0], [0], [1], [0, 0, 1, 1], [], []>} : vector<16x32xf32>, vector<32x32xf32>, vector<16x32xf32> -> vector<16x32xf32>
    %c0_9 = arith.constant 0 : index
    %c0_10 = arith.constant 0 : index
    %11 = vector.load %arg8[%c0_9, %c0_10] : memref<1x32xf32, #tpu.memory_space<vmem>>, vector<1x32xf32>
    %12 = vector.broadcast %11 : vector<1x32xf32> to vector<16x32xf32>
    %13 = arith.addf %10, %12 : vector<16x32xf32>
    %14 = vector.shape_cast %13 : vector<16x32xf32> to vector<16x4x8xf32>
    %15 = tpu.transpose %14, [1, 0, 2] : vector<16x4x8xf32> -> vector<4x16x8xf32>
    %c0_11 = arith.constant 0 : index
    %c0_12 = arith.constant 0 : index
    %16 = vector.load %arg3[%c0_11, %c0_12] : memref<32x32xf32, #tpu.memory_space<vmem>>, vector<32x32xf32>
    %c0_13 = arith.constant 0 : index
    %c0_14 = arith.constant 0 : index
    %17 = vector.load %arg4[%c0_13, %c0_14] : memref<1x32xf32, #tpu.memory_space<vmem>>, vector<1x32xf32>
    %c0_15 = arith.constant 0 : index
    %c0_16 = arith.constant 0 : index
    %18 = vector.load %arg9[%c0_15, %c0_16] : memref<32x32xf32, #tpu.memory_space<vmem>>, vector<32x32xf32>
    %c0_17 = arith.constant 0 : index
    %c0_18 = arith.constant 0 : index
    %19 = vector.load %arg10[%c0_17, %c0_18] : memref<1x32xf32, #tpu.memory_space<vmem>>, vector<1x32xf32>
    %c0_19 = arith.constant 0 : index
    %c0_20 = arith.constant 0 : index
    %20 = vector.load %arg13[%c0_19, %c0_20] : memref<32x64xf32, #tpu.memory_space<vmem>>, vector<32x64xf32>
    %c0_21 = arith.constant 0 : index
    %c0_22 = arith.constant 0 : index
    %21 = vector.load %arg14[%c0_21, %c0_22] : memref<1x64xf32, #tpu.memory_space<vmem>>, vector<1x64xf32>
    %c0_23 = arith.constant 0 : index
    %c0_24 = arith.constant 0 : index
    %22 = vector.load %arg15[%c0_23, %c0_24] : memref<64x32xf32, #tpu.memory_space<vmem>>, vector<64x32xf32>
    %c0_25 = arith.constant 0 : index
    %c0_26 = arith.constant 0 : index
    %23 = vector.load %arg16[%c0_25, %c0_26] : memref<1x32xf32, #tpu.memory_space<vmem>>, vector<1x32xf32>
    %c0_27 = arith.constant 0 : index
    %c0_28 = arith.constant 0 : index
    %24 = vector.load %arg11[%c0_27, %c0_28] : memref<1x32xf32, #tpu.memory_space<vmem>>, vector<1x32xf32>
    %c0_29 = arith.constant 0 : index
    %c0_30 = arith.constant 0 : index
    %25 = vector.load %arg12[%c0_29, %c0_30] : memref<1x32xf32, #tpu.memory_space<vmem>>, vector<1x32xf32>
    %c0_31 = arith.constant 0 : index
    %c0_32 = arith.constant 0 : index
    %26 = vector.load %arg17[%c0_31, %c0_32] : memref<1x32xf32, #tpu.memory_space<vmem>>, vector<1x32xf32>
    %c0_33 = arith.constant 0 : index
    %c0_34 = arith.constant 0 : index
    %27 = vector.load %arg18[%c0_33, %c0_34] : memref<1x32xf32, #tpu.memory_space<vmem>>, vector<1x32xf32>
    %c0_i32 = arith.constant 0 : i32
    %c2_i32 = arith.constant 2 : i32
    %28 = arith.addi %c0_i32, %c2_i32 : i32
    %c1_i32 = arith.constant 1 : i32
    scf.for %arg21 = %c0_i32 to %28 step %c1_i32  : i32 {
      %c1_i32_36 = arith.constant 1 : i32
      %29 = arith.muli %arg21, %c1_i32_36 : i32
      %c0_i32_37 = arith.constant 0 : i32
      %30 = arith.addi %c0_i32_37, %29 : i32
      %c8_i32 = arith.constant 8 : i32
      %31 = arith.muli %30, %c8_i32 : i32
      %32 = tpu.assume_multiple %31, 8 : i32
      %c0_38 = arith.constant 0 : index
      %33 = arith.index_cast %32 : i32 to index
      %c0_39 = arith.constant 0 : index
      %34 = vector.load %arg1[%c0_38, %33, %c0_39] : memref<1x16x32xf32, #tpu.memory_space<vmem>>, vector<1x8x32xf32>
      %35 = vector.shape_cast %34 : vector<1x8x32xf32> to vector<8x32xf32>
      %cst_40 = arith.constant dense<0.000000e+00> : vector<8x32xf32>
      %36 = tpu.matmul %35, %16, %cst_40 {dimension_numbers = #tpu.dot_dimension_numbers<[1], [0], [0], [1], [0, 0, 1, 1], [], []>} : vector<8x32xf32>, vector<32x32xf32>, vector<8x32xf32> -> vector<8x32xf32>
      %37 = vector.broadcast %17 : vector<1x32xf32> to vector<8x32xf32>
      %38 = arith.addf %36, %37 : vector<8x32xf32>
      %cst_41 = arith.constant 0.353553385 : f32
      %39 = vector.broadcast %cst_41 : f32 to vector<8x32xf32>
      %40 = arith.mulf %38, %39 : vector<8x32xf32>
      %41 = vector.shape_cast %40 : vector<8x32xf32> to vector<8x4x8xf32>
      %42 = tpu.transpose %41, [1, 0, 2] : vector<8x4x8xf32> -> vector<4x8x8xf32>
      "tpu.trace_start"() <{level = 10 : i32, message = "hqd,hkd->hqk"}> : () -> ()
      %cst_42 = arith.constant dense<0.000000e+00> : vector<4x8x16xf32>
      %43 = tpu.matmul %42, %8, %cst_42 {dimension_numbers = #tpu.dot_dimension_numbers<[2], [2], [1], [1], [0, 0, 0, 1, 1, 1], [0], [0]>} : vector<4x8x8xf32>, vector<4x16x8xf32>, vector<4x8x16xf32> -> vector<4x8x16xf32>
      "tpu.trace_stop"() : () -> ()
      %c0_43 = arith.constant 0 : index
      %44 = arith.index_cast %32 : i32 to index
      %c0_44 = arith.constant 0 : index
      %45 = vector.load %arg2[%c0_43, %44, %c0_44] : memref<1x16x16xbf16, #tpu.memory_space<vmem>>, vector<1x8x16xbf16>
      %46 = vector.shape_cast %45 : vector<1x8x16xbf16> to vector<8x16xbf16>
      %47 = arith.extf %46 : vector<8x16xbf16> to vector<8x16xf32>
      %48 = vector.shape_cast %47 : vector<8x16xf32> to vector<1x8x16xf32>
      %49 = vector.broadcast %48 : vector<1x8x16xf32> to vector<4x8x16xf32>
      %50 = arith.addf %43, %49 : vector<4x8x16xf32>
      %cst_45 = arith.constant dense<0xFF800000> : vector<4x8xf32>
      %51 = vector.multi_reduction <maximumf>, %50, %cst_45 [2] : vector<4x8x16xf32> to vector<4x8xf32>
      %52 = vector.shape_cast %51 : vector<4x8xf32> to vector<4x8x1xf32>
      %53 = vector.broadcast %52 : vector<4x8x1xf32> to vector<4x8x16xf32>
      %54 = arith.subf %50, %53 : vector<4x8x16xf32>
      %55 = math.exp %54 : vector<4x8x16xf32>
      %cst_46 = arith.constant dense<0.000000e+00> : vector<4x8xf32>
      %56 = vector.multi_reduction <add>, %55, %cst_46 [2] : vector<4x8x16xf32> to vector<4x8xf32>
      %57 = vector.shape_cast %56 : vector<4x8xf32> to vector<4x8x1xf32>
      %58 = tpu.reciprocal %57 {approx = true} : vector<4x8x1xf32> -> vector<4x8x1xf32>
      %59 = vector.broadcast %58 : vector<4x8x1xf32> to vector<4x8x16xf32>
      %60 = arith.mulf %55, %59 : vector<4x8x16xf32>
      %c0_47 = arith.constant 0 : index
      %c0_48 = arith.constant 0 : index
      %61 = arith.index_cast %32 : i32 to index
      %c0_49 = arith.constant 0 : index
      %62 = vector.load %arg20[%c0_47, %c0_48, %61, %c0_49] : memref<1x4x16x16xf32, #tpu.memory_space<vmem>>, vector<1x4x8x16xf32>
      %63 = vector.shape_cast %62 : vector<1x4x8x16xf32> to vector<4x8x16xf32>
      %64 = vector.shape_cast %60 : vector<4x8x16xf32> to vector<1x4x8x16xf32>
      tpu.vector_store %arg20[%c0_47, %c0_48, %61, %c0_49], %64 {strides = array<i32>} : memref<1x4x16x16xf32, #tpu.memory_space<vmem>>, vector<1x4x8x16xf32>,
      "tpu.trace_start"() <{level = 10 : i32, message = "hqk,hkd->hqd"}> : () -> ()
      %cst_50 = arith.constant dense<0.000000e+00> : vector<4x8x8xf32>
      %65 = tpu.matmul %60, %15, %cst_50 {dimension_numbers = #tpu.dot_dimension_numbers<[2], [1], [1], [2], [0, 0, 0, 1, 1, 2], [0], [0]>} : vector<4x8x16xf32>, vector<4x16x8xf32>, vector<4x8x8xf32> -> vector<4x8x8xf32>
      "tpu.trace_stop"() : () -> ()
      %66 = tpu.transpose %65, [1, 0, 2] : vector<4x8x8xf32> -> vector<8x4x8xf32>
      %67 = vector.shape_cast %66 : vector<8x4x8xf32> to vector<8x32xf32>
      %cst_51 = arith.constant dense<0.000000e+00> : vector<8x32xf32>
      %68 = tpu.matmul %67, %18, %cst_51 {dimension_numbers = #tpu.dot_dimension_numbers<[1], [0], [0], [1], [0, 0, 1, 1], [], []>} : vector<8x32xf32>, vector<32x32xf32>, vector<8x32xf32> -> vector<8x32xf32>
      %69 = vector.broadcast %19 : vector<1x32xf32> to vector<8x32xf32>
      %70 = arith.addf %68, %69 : vector<8x32xf32>
      %71 = arith.addf %70, %35 : vector<8x32xf32>
      %cst_52 = arith.constant dense<0.000000e+00> : vector<8xf32>
      %72 = vector.multi_reduction <add>, %71, %cst_52 [1] : vector<8x32xf32> to vector<8xf32>
      %73 = vector.shape_cast %72 : vector<8xf32> to vector<8x1xf32>
      %cst_53 = arith.constant 3.200000e+01 : f32
      %74 = vector.broadcast %cst_53 : f32 to vector<8x1xf32>
      %75 = arith.divf %73, %74 : vector<8x1xf32>
      %76 = vector.broadcast %75 : vector<8x1xf32> to vector<8x32xf32>
      %77 = arith.subf %71, %76 : vector<8x32xf32>
      %78 = arith.mulf %77, %77 : vector<8x32xf32>
      %cst_54 = arith.constant dense<0.000000e+00> : vector<8xf32>
      %79 = vector.multi_reduction <add>, %78, %cst_54 [1] : vector<8x32xf32> to vector<8xf32>
      %80 = vector.shape_cast %79 : vector<8xf32> to vector<8x1xf32>
      %cst_55 = arith.constant 3.200000e+01 : f32
      %81 = vector.broadcast %cst_55 : f32 to vector<8x1xf32>
      %82 = arith.divf %80, %81 : vector<8x1xf32>
      %83 = vector.broadcast %75 : vector<8x1xf32> to vector<8x32xf32>
      %84 = arith.subf %71, %83 : vector<8x32xf32>
      %cst_56 = arith.constant 9.99999996E-13 : f32
      %85 = vector.broadcast %cst_56 : f32 to vector<8x1xf32>
      %86 = arith.addf %82, %85 : vector<8x1xf32>
      %87 = math.rsqrt %86 : vector<8x1xf32>
      %88 = vector.broadcast %87 : vector<8x1xf32> to vector<8x32xf32>
      %89 = arith.mulf %84, %88 : vector<8x32xf32>
      %90 = vector.broadcast %24 : vector<1x32xf32> to vector<8x32xf32>
      %91 = arith.mulf %89, %90 : vector<8x32xf32>
      %92 = vector.broadcast %25 : vector<1x32xf32> to vector<8x32xf32>
      %93 = arith.addf %91, %92 : vector<8x32xf32>
      %cst_57 = arith.constant dense<0.000000e+00> : vector<8x64xf32>
      %94 = tpu.matmul %93, %20, %cst_57 {dimension_numbers = #tpu.dot_dimension_numbers<[1], [0], [0], [1], [0, 0, 1, 1], [], []>} : vector<8x32xf32>, vector<32x64xf32>, vector<8x64xf32> -> vector<8x64xf32>
      %95 = vector.broadcast %21 : vector<1x64xf32> to vector<8x64xf32>
      %96 = arith.addf %94, %95 : vector<8x64xf32>
      %cst_58 = arith.constant 0.000000e+00 : f32
      %97 = vector.broadcast %cst_58 : f32 to vector<8x64xf32>
      %98 = arith.maximumf %96, %97 : vector<8x64xf32>
      %cst_59 = arith.constant dense<0.000000e+00> : vector<8x32xf32>
      %99 = tpu.matmul %98, %22, %cst_59 {dimension_numbers = #tpu.dot_dimension_numbers<[1], [0], [0], [1], [0, 0, 1, 1], [], []>} : vector<8x64xf32>, vector<64x32xf32>, vector<8x32xf32> -> vector<8x32xf32>
      %100 = vector.broadcast %23 : vector<1x32xf32> to vector<8x32xf32>
      %101 = arith.addf %99, %100 : vector<8x32xf32>
      %102 = arith.addf %101, %93 : vector<8x32xf32>
      %cst_60 = arith.constant dense<0.000000e+00> : vector<8xf32>
      %103 = vector.multi_reduction <add>, %102, %cst_60 [1] : vector<8x32xf32> to vector<8xf32>
      %104 = vector.shape_cast %103 : vector<8xf32> to vector<8x1xf32>
      %cst_61 = arith.constant 3.200000e+01 : f32
      %105 = vector.broadcast %cst_61 : f32 to vector<8x1xf32>
      %106 = arith.divf %104, %105 : vector<8x1xf32>
      %107 = vector.broadcast %106 : vector<8x1xf32> to vector<8x32xf32>
      %108 = arith.subf %102, %107 : vector<8x32xf32>
      %109 = arith.mulf %108, %108 : vector<8x32xf32>
      %cst_62 = arith.constant dense<0.000000e+00> : vector<8xf32>
      %110 = vector.multi_reduction <add>, %109, %cst_62 [1] : vector<8x32xf32> to vector<8xf32>
      %111 = vector.shape_cast %110 : vector<8xf32> to vector<8x1xf32>
      %cst_63 = arith.constant 3.200000e+01 : f32
      %112 = vector.broadcast %cst_63 : f32 to vector<8x1xf32>
      %113 = arith.divf %111, %112 : vector<8x1xf32>
      %114 = vector.broadcast %106 : vector<8x1xf32> to vector<8x32xf32>
      %115 = arith.subf %102, %114 : vector<8x32xf32>
      %cst_64 = arith.constant 9.99999996E-13 : f32
      %116 = vector.broadcast %cst_64 : f32 to vector<8x1xf32>
      %117 = arith.addf %113, %116 : vector<8x1xf32>
      %118 = math.rsqrt %117 : vector<8x1xf32>
      %119 = vector.broadcast %118 : vector<8x1xf32> to vector<8x32xf32>
      %120 = arith.mulf %115, %119 : vector<8x32xf32>
      %121 = vector.broadcast %26 : vector<1x32xf32> to vector<8x32xf32>
      %122 = arith.mulf %120, %121 : vector<8x32xf32>
      %123 = vector.broadcast %27 : vector<1x32xf32> to vector<8x32xf32>
      %124 = arith.addf %122, %123 : vector<8x32xf32>
      %c0_65 = arith.constant 0 : index
      %125 = arith.index_cast %32 : i32 to index
      %c0_66 = arith.constant 0 : index
      %126 = vector.load %arg19[%c0_65, %125, %c0_66] : memref<1x16x32xf32, #tpu.memory_space<vmem>>, vector<1x8x32xf32>
      %127 = vector.shape_cast %126 : vector<1x8x32xf32> to vector<8x32xf32>
      %128 = vector.shape_cast %124 : vector<8x32xf32> to vector<1x8x32xf32>
      tpu.vector_store %arg19[%c0_65, %125, %c0_66], %128 {strides = array<i32>} : memref<1x16x32xf32, #tpu.memory_space<vmem>>, vector<1x8x32xf32>,
    }
    %c2_i32_35 = arith.constant 2 : i32
    return
  }
  func.func @transform_0(%arg0: i32) -> (i32, i32, i32) {
    %c0_i32 = arith.constant 0 : i32
    %c0_i32_0 = arith.constant 0 : i32
    %c0_i32_1 = arith.constant 0 : i32
    return %arg0, %c0_i32, %c0_i32_0 : i32, i32, i32
  }
  func.func @transform_1(%arg0: i32) -> (i32, i32, i32) {
    %c0_i32 = arith.constant 0 : i32
    %c0_i32_0 = arith.constant 0 : i32
    %c0_i32_1 = arith.constant 0 : i32
    return %arg0, %c0_i32, %c0_i32_0 : i32, i32, i32
  }
  func.func @transform_2(%arg0: i32) -> (i32, i32) {
    %c0_i32 = arith.constant 0 : i32
    %c0_i32_0 = arith.constant 0 : i32
    %c0_i32_1 = arith.constant 0 : i32
    return %c0_i32, %c0_i32_0 : i32, i32
  }
  func.func @transform_3(%arg0: i32) -> (i32, i32) {
    %c0_i32 = arith.constant 0 : i32
    %c0_i32_0 = arith.constant 0 : i32
    %c0_i32_1 = arith.constant 0 : i32
    return %c0_i32, %c0_i32_0 : i32, i32
  }
  func.func @transform_4(%arg0: i32) -> (i32, i32) {
    %c0_i32 = arith.constant 0 : i32
    %c0_i32_0 = arith.constant 0 : i32
    %c0_i32_1 = arith.constant 0 : i32
    return %c0_i32, %c0_i32_0 : i32, i32
  }
  func.func @transform_5(%arg0: i32) -> (i32, i32) {
    %c0_i32 = arith.constant 0 : i32
    %c0_i32_0 = arith.constant 0 : i32
    %c0_i32_1 = arith.constant 0 : i32
    return %c0_i32, %c0_i32_0 : i32, i32
  }
  func.func @transform_6(%arg0: i32) -> (i32, i32) {
    %c0_i32 = arith.constant 0 : i32
    %c0_i32_0 = arith.constant 0 : i32
    %c0_i32_1 = arith.constant 0 : i32
    return %c0_i32, %c0_i32_0 : i32, i32
  }
  func.func @transform_7(%arg0: i32) -> (i32, i32) {
    %c0_i32 = arith.constant 0 : i32
    %c0_i32_0 = arith.constant 0 : i32
    %c0_i32_1 = arith.constant 0 : i32
    return %c0_i32, %c0_i32_0 : i32, i32
  }
  func.func @transform_8(%arg0: i32) -> (i32, i32) {
    %c0_i32 = arith.constant 0 : i32
    %c0_i32_0 = arith.constant 0 : i32
    %c0_i32_1 = arith.constant 0 : i32
    return %c0_i32, %c0_i32_0 : i32, i32
  }
  func.func @transform_9(%arg0: i32) -> (i32, i32) {
    %c0_i32 = arith.constant 0 : i32
    %c0_i32_0 = arith.constant 0 : i32
    %c0_i32_1 = arith.constant 0 : i32
    return %c0_i32, %c0_i32_0 : i32, i32
  }
  func.func @transform_10(%arg0: i32) -> (i32, i32) {
    %c0_i32 = arith.constant 0 : i32
    %c0_i32_0 = arith.constant 0 : i32
    %c0_i32_1 = arith.constant 0 : i32
    return %c0_i32, %c0_i32_0 : i32, i32
  }
  func.func @transform_11(%arg0: i32) -> (i32, i32) {
    %c0_i32 = arith.constant 0 : i32
    %c0_i32_0 = arith.constant 0 : i32
    %c0_i32_1 = arith.constant 0 : i32
    return %c0_i32, %c0_i32_0 : i32, i32
  }
  func.func @transform_12(%arg0: i32) -> (i32, i32) {
    %c0_i32 = arith.constant 0 : i32
    %c0_i32_0 = arith.constant 0 : i32
    %c0_i32_1 = arith.constant 0 : i32
    return %c0_i32, %c0_i32_0 : i32, i32
  }
  func.func @transform_13(%arg0: i32) -> (i32, i32) {
    %c0_i32 = arith.constant 0 : i32
    %c0_i32_0 = arith.constant 0 : i32
    %c0_i32_1 = arith.constant 0 : i32
    return %c0_i32, %c0_i32_0 : i32, i32
  }
  func.func @transform_14(%arg0: i32) -> (i32, i32) {
    %c0_i32 = arith.constant 0 : i32
    %c0_i32_0 = arith.constant 0 : i32
    %c0_i32_1 = arith.constant 0 : i32
    return %c0_i32, %c0_i32_0 : i32, i32
  }
  func.func @transform_15(%arg0: i32) -> (i32, i32) {
    %c0_i32 = arith.constant 0 : i32
    %c0_i32_0 = arith.constant 0 : i32
    %c0_i32_1 = arith.constant 0 : i32
    return %c0_i32, %c0_i32_0 : i32, i32
  }
  func.func @transform_16(%arg0: i32) -> (i32, i32) {
    %c0_i32 = arith.constant 0 : i32
    %c0_i32_0 = arith.constant 0 : i32
    %c0_i32_1 = arith.constant 0 : i32
    return %c0_i32, %c0_i32_0 : i32, i32
  }
  func.func @transform_17(%arg0: i32) -> (i32, i32) {
    %c0_i32 = arith.constant 0 : i32
    %c0_i32_0 = arith.constant 0 : i32
    %c0_i32_1 = arith.constant 0 : i32
    return %c0_i32, %c0_i32_0 : i32, i32
  }
  func.func @transform_18(%arg0: i32) -> (i32, i32, i32) {
    %c0_i32 = arith.constant 0 : i32
    %c0_i32_0 = arith.constant 0 : i32
    %c0_i32_1 = arith.constant 0 : i32
    return %arg0, %c0_i32, %c0_i32_0 : i32, i32, i32
  }
  func.func @transform_19(%arg0: i32) -> (i32, i32, i32, i32) {
    %c0_i32 = arith.constant 0 : i32
    %c0_i32_0 = arith.constant 0 : i32
    %c0_i32_1 = arith.constant 0 : i32
    %c0_i32_2 = arith.constant 0 : i32
    return %arg0, %c0_i32, %c0_i32_0, %c0_i32_1 : i32, i32, i32, i32
  }
}

</mosaic_0001>

<bundles_post_ra>
// kernel: tpu_custom_call.1
= control target key start
LH: loop header
LB: loop body
LE: loop exit
PB: predicated region body
PF: predicated region fallthrough
CT: control target
= control target key end

     0   :  { %s4710_s0 = inlined_call_operand.vmem [shape: f32[2,16,32], index: 0, kind: input, shape index: {}]   ;;  %s4711_s1 = inlined_call_operand.hbm [shape: bf16[2,16,16], index: 1, kind: input, shape index: {}]   ;;  %s4712_s2 = inlined_call_operand.vmem [shape: f32[32,32], index: 2, kind: input, shape index: {}]   ;;  %s4713_s3 = inlined_call_operand.vmem [shape: f32[1,32], index: 3, kind: input, shape index: {}]   ;;  %s4714_s4 = inlined_call_operand.vmem [shape: f32[32,32], index: 4, kind: input, shape index: {}]   ;;  %s4715_s5 = inlined_call_operand.vmem [shape: f32[1,32], index: 5, kind: input, shape index: {}]   ;;  %s4716_s6 = inlined_call_operand.hbm [shape: f32[32,32], index: 6, kind: input, shape index: {}]   ;;  %s4717_s7 = inlined_call_operand.vmem [shape: f32[1,32], index: 7, kind: input, shape index: {}]   ;;  %s4718_s8 = inlined_call_operand.hbm [shape: f32[32,32], index: 8, kind: input, shape index: {}]   ;;  %s4719_s9 = inlined_call_operand.vmem [shape: f32[1,32], index: 9, kind: input, shape index: {}]   ;;  %s4720_s10 = inlined_call_operand.vmem [shape: f32[1,32], index: 10, kind: input, shape index: {}]   ;;  %s4721_s11 = inlined_call_operand.vmem [shape: f32[1,32], index: 11, kind: input, shape index: {}]   ;;  %s4722_s12 = inlined_call_operand.hbm [shape: f32[32,64], index: 12, kind: input, shape index: {}]   ;;  %s4723_s13 = inlined_call_operand.vmem [shape: f32[1,64], index: 13, kind: input, shape index: {}]   ;;  %s4724_s14 = inlined_call_operand.vmem [shape: f32[64,32], index: 14, kind: input, shape index: {}]   ;;  %s4725_s15 = inlined_call_operand.vmem [shape: f32[1,32], index: 15, kind: input, shape index: {}]   ;;  %s4726_s16 = inlined_call_operand.vmem [shape: f32[1,32], index: 16, kind: input, shape index: {}]   ;;  %s4727_s17 = inlined_call_operand.vmem [shape: f32[1,32], index: 17, kind: input, shape index: {}]   ;;  %s4728_s18 = inlined_call_operand.hbm [shape: f32[2,16,32], index: 18, kind: output, shape index: {0}]   ;;  %s4729_s19 = inlined_call_operand.hbm [shape: f32[2,4,16,16], index: 19, kind: output, shape index: {1}]  }
   0x1   :  { %4745 = sst [smem:[#allocation25_spill]] %s4710_s0 }
   0x2   :  { %4746 = sst [smem:[#allocation26_spill]] %s4711_s1 }
   0x3   :  { %4747 = sst [smem:[#allocation27_spill]] %s4712_s2 }
   0x4   :  { %4748 = sst [smem:[#allocation28_spill]] %s4713_s3 }
   0x5   :  { %4749 = sst [smem:[#allocation29_spill]] %s4714_s4 }
   0x6   :  { %4750 = sst [smem:[#allocation30_spill]] %s4715_s5 }
   0x7   :  { %4751 = sst [smem:[#allocation31_spill]] %s4716_s6 }
   0x8   :  { %4752 = sst [smem:[#allocation32_spill]] %s4717_s7 }
   0x9   :  { %4753 = sst [smem:[#allocation33_spill]] %s4718_s8 }
   0xa   :  { %4754 = sst [smem:[#allocation34_spill]] %s4719_s9 }
   0xb   :  { %4755 = sst [smem:[#allocation35_spill]] %s4720_s10 }
   0xc   :  { %4756 = sst [smem:[#allocation36_spill]] %s4726_s16 }
   0xd   :  { %4757 = sst [smem:[#allocation37_spill]] %s4727_s17 }
   0xe   :  { %4758 = sst [smem:[#allocation38_spill]] %s4728_s18 }
   0xf   :  { %4759 = sst [smem:[#allocation39_spill]] %s4729_s19 }
  0x10   :  { %25 = vsyncpa [#allocation3], 0 }
  0x11   :  { %27 = vsyncpa [#allocation3 + $0x1], 0 }
  0x12   :  { %28 = vsyncpa [#allocation6], 0 }
  0x13   :  { %29 = vsyncpa [#allocation9], 0 }
  0x14   :  { %30 = vsyncpa [#allocation4], 0 }
  0x15   :  { %32 = vsyncpa [#allocation4 + $0x1], 0 }
  0x16   :  { %33 = vsyncpa [#allocation12], 0 }
  0x17   :  { %35 = vsyncpa [#allocation12 + $0x1], 0  ;;  %s3861_s0 = smov 0   ;;  %s3863_s30 = smov 0  }
  0x18   :  { %s3865_s20 = smov 0   ;;  %s3867_s21 = smov 0  }
  0x19 LB: > { %4760 = sst [smem:[#allocation18_spill]] %s3717_s0  ;;  %s3882_s1 = sadd.s32 4294967295, %s3729_s21   ;;  %s3729_s21 = sphi %s3867_s21, %s4830_s21   ;;  %s3725_s20 = sphi %s3865_s20, %s4829_s20   ;;  %s3721_s30 = sphi %s3863_s30, %s4828_s30   ;;  %s3717_s0 = sphi %s3861_s0, %s4827_s0  }
  0x1a   : > { %s3033_s22 = sadd.s32 4294967294, %s3729_s21   ;;  %p87_p0 = scmp.ne.s32.totalorder %s3721_s30, %s3717_s0 }
  0x1b   : > { %p4736_p1 = scmp.eq.s32.totalorder %s3882_s1, 0  ;;  %p453_p3 = scmp.eq.s32.totalorder %s3033_s22, 1 }
  0x1c   : > { %p3034_p5 = scmp.ge.s32.totalorder %s3729_s21, 1  ;;  %p486_p7 = scmp.lt.s32.totalorder %s3729_s21, 3 }
  0x1d   : > { %p3891_p4 = por %p4736_p1, %p87_p0  ;;  %p3896_p6 = por %p453_p3, %p87_p0 }
  0x1e   : > { %p3901_p8 = pnand %p3034_p5, %p486_p7  ;;  %s3735_s25 = smov [#allocation5]  }
  0x1f   : > { %s4761_s2 = scalar_select %p3891_p4, 1, 0 }
  0x20   : > { %s4762_s23 = scalar_select %p3896_p6, 1, 0 }
  0x21   : > { %s4764_s24 = scalar_select %p3901_p8, 1, 0 }
  0x22   : > { %4763 = sst [smem:[#allocation19_spill]] %s4762_s23  ;;  %s510_s3 = sshll.u32 %s3735_s25, 4  ;;  %s3905_s3 = int_to_ptr.vmem [resolvable:$true] %s510_s3 }
  0x23   : > { %p3393_p9 = pneg %p3901_p8  ;;  %s3736_s27 = smov [#allocation7]  }
  0x24   : > { %s526_s28 = sshll.u32 %s3736_s27, 4  ;;  %s3737_s29 = smov [#allocation8]   ;;  %s3916_s28 = int_to_ptr.vmem [resolvable:$true] %s526_s28 }
  0x25   : > { %p3912_p11 = pnand %p3393_p9, %p4736_p1  ;;  %s3918_s22 = sshll.u32 %s3737_s29, 4  ;;  %s549_s22 = int_to_ptr.vmem [resolvable:$true] %s3918_s22 }
  0x26   : > { %s4766_s6 = sld [smem:[#allocation31_spill]] }
  0x27   : > { %p3928_p13 = pneg %p3912_p11 }
  0x2c   : > { %s3505_s0 = scalar_lea.hbm %s4766_s6, 512 }
  0x2d   : > { %p3506_p12 = scmp.ne.s32.totalorder %s4766_s6, %s3505_s0  ;;  %p3512_p5 = scmp.lt.u32.totalorder %s3505_s0, %s4766_s6 }
  0x2f   : > { %p3508_p0 = pnand %p3928_p13, %p3506_p12 }
  0x31   : > { %p3509_p3 = pneg %p3508_p0 }
  0x33   : > { %p3514_p7 = pnand %p3512_p5, %p3509_p3 }
  0x35   : > { %3517 = shalt.err (!%p3514_p7)
}
  0x36   : > { %s3518_s18 = scalar_lea.vmem %s3905_s3, 512  ;;  %p3526_p2 = scmp.lt.s32.totalorder %s3905_s3, %s3905_s3 }
  0x37   : > { %p3519_p9 = scmp.ne.s32.totalorder %s3905_s3, %s3518_s18  ;;  %p3527_p6 = scmp.lt.s32.totalorder %s3518_s18, %s3518_s18 }
  0x39   : > { %p3521_p10 = pnand %p3519_p9, %p3928_p13  ;;  %p3528_p12 = por %p3527_p6, %p3526_p2 }
  0x3b   : > { %p3522_p1 = pneg %p3521_p10 }
  0x3d   : > { %p3529_p0 = pnand %p3528_p12, %p3522_p1 }
  0x3f   : > { %3532 = shalt.err (!%p3529_p0)
}
  0x40   : > { %s3738_s19 = smov 128   ;;  %s3739_s0 = smov 8  }
  0x41   : > { %3396 = dma.hbm_to_vmem [thread:$0]  (!%p3912_p11), %s4766_s6, 512, %s3905_s3, [#allocation6], %s3738_s19, %s3738_s19, %s3739_s0  }
  0x42   : > { %s4768_s8 = sld [smem:[#allocation33_spill]] }
  0x48   : > { %s3533_s18 = scalar_lea.hbm %s4768_s8, 512 }
  0x49   : > { %p3534_p1 = scmp.ne.s32.totalorder %s4768_s8, %s3533_s18  ;;  %p3540_p10 = scmp.lt.u32.totalorder %s3533_s18, %s4768_s8 }
  0x4b   : > { %p3536_p2 = pnand %p3534_p1, %p3928_p13 }
  0x4d   : > { %p3537_p6 = pneg %p3536_p2 }
  0x4f   : > { %p3542_p3 = pnand %p3540_p10, %p3537_p6 }
  0x51   : > { %3545 = shalt.err (!%p3542_p3)
}
  0x52   : > { %s3546_s3 = scalar_lea.vmem %s3916_s28, 512  ;;  %p3554_p12 = scmp.lt.s32.totalorder %s3916_s28, %s3916_s28 }
  0x53   : > { %p3547_p5 = scmp.ne.s32.totalorder %s3916_s28, %s3546_s3  ;;  %p3555_p0 = scmp.lt.s32.totalorder %s3546_s3, %s3546_s3 }
  0x55   : > { %p3549_p7 = pnand %p3547_p5, %p3928_p13  ;;  %p3556_p1 = por %p3555_p0, %p3554_p12 }
  0x57   : > { %p3550_p9 = pneg %p3549_p7 }
  0x59   : > { %p3557_p2 = pnand %p3556_p1, %p3550_p9 }
  0x5b   : > { %3560 = shalt.err (!%p3557_p2)
}
  0x5c   : > { %3399 = dma.hbm_to_vmem [thread:$0]  (!%p3912_p11), %s4768_s8, 512, %s3916_s28, [#allocation6], %s3738_s19, %s3738_s19, %s3739_s0  }
  0x5d   : > { %s3561_s23 = scalar_lea.hbm %s4722_s12, 512 }
  0x5e   : > { %p3562_p6 = scmp.ne.s32.totalorder %s4722_s12, %s3561_s23  ;;  %p3568_p5 = scmp.lt.u32.totalorder %s3561_s23, %s4722_s12 }
  0x60   : > { %p3564_p10 = pnand %p3562_p6, %p3928_p13 }
  0x62   : > { %p3565_p3 = pneg %p3564_p10 }
  0x64   : > { %p3570_p7 = pnand %p3568_p5, %p3565_p3 }
  0x66   : > { %3573 = shalt.err (!%p3570_p7)
}
  0x67   : > { %s3574_s3 = scalar_lea.vmem %s549_s22, 512  ;;  %p3582_p1 = scmp.lt.s32.totalorder %s549_s22, %s549_s22 }
  0x68   : > { %p3575_p9 = scmp.ne.s32.totalorder %s549_s22, %s3574_s3  ;;  %p3583_p2 = scmp.lt.s32.totalorder %s3574_s3, %s3574_s3 }
  0x6a   : > { %p3577_p12 = pnand %p3575_p9, %p3928_p13  ;;  %p3584_p4 = por %p3583_p2, %p3582_p1 }
  0x6c   : > { %p3578_p0 = pneg %p3577_p12 }
  0x6e   : > { %p3585_p8 = pnand %p3584_p4, %p3578_p0 }
  0x70   : > { %3588 = shalt.err (!%p3585_p8)
}
  0x71   : > { %3402 = dma.hbm_to_vmem [thread:$0]  (!%p3912_p11), %s4722_s12, 512, %s549_s22, [#allocation9], %s3738_s19, %s3738_s19, %s3739_s0  }
  0x72   : > { %s4001_s7 = sadd.s32 1, %s3729_s21   ;;  %s74_s5 = sadd.s32 1, %s3725_s20 }
  0x73   : > { %s71_s26 = ssub.s32 %s3729_s21, %s4001_s7  ;;  %p81_p8 = scmp.ne.s32.totalorder %s3725_s20, %s3721_s30 }
  0x74   : > { %p72_p4 = scmp.eq.s32.totalorder %s71_s26, 0  ;;  %p82_p13 = scmp.eq.s32.totalorder %s3729_s21, 0 }
  0x75   : > { %p3417_p6 = scmp.lt.s32.totalorder %s3729_s21, 2  ;;  %p4769_p3 = scmp.eq.s32.totalorder %s3882_s1, 1 }
  0x76   : > { %s4011_s16 = scalar_select %p72_p4, %s3725_s20, %s74_s5  }
  0x77   : > { %p83_p10 = por %p82_p13, %p81_p8  ;;  %p4015_p5 = por %p4769_p3, %p81_p8 }
  0x78   : > { %s585_s23 = sand.u32 1, %s3725_s20   ;;  %s3107_s25 = sshll.u32 %s3729_s21, 7 }
  0x79   : > { %s3039_s22 = sshll.u32 %s585_s23, 3  ;;  %s4771_s27 = sld [smem:[#allocation26_spill]] }
  0x7a   : > { %s589_s18 = scalar_lea.vmem [#allocation2], %s3039_s22  ;;  %p4026_p11 = pnand %p3417_p6, %p83_p10 }
  0x7b   : > { %s596_s3 = sshll.u32 %s589_s18, 4  ;;  %s4032_s4 = scalar_lea.sflag [#allocation3], %s585_s23  ;;  %s4030_s3 = int_to_ptr.vmem [resolvable:$true] %s596_s3 }
  0x7c   : > { %p3591_p9 = pneg %p4026_p11 }
  0x7f   : > { %s4024_s29 = scalar_lea.hbm %s4771_s27, %s3107_s25  ;;  %s3594_s22 = scalar_lea.hbm %s4771_s27, 256 }
  0x80   : > { %s3589_s26 = scalar_lea.hbm %s4024_s29, 128  ;;  %p3595_p1 = scmp.lt.u32.totalorder %s4024_s29, %s4771_s27 }
  0x81   : > { %p3590_p7 = scmp.ne.s32.totalorder %s4024_s29, %s3589_s26  ;;  %p3596_p2 = scmp.lt.u32.totalorder %s3594_s22, %s3589_s26 }
  0x82   : > { %p3598_p8 = scmp.lt.u32.totalorder %s3589_s26, %s4024_s29 }
  0x83   : > { %p3592_p12 = pnand %p3591_p9, %p3590_p7  ;;  %p3597_p4 = por %p3596_p2, %p3595_p1 }
  0x85   : > { %p3593_p0 = pneg %p3592_p12  ;;  %p3599_p13 = por %p3598_p8, %p3597_p4 }
  0x87   : > { %p3600_p6 = pnand %p3599_p13, %p3593_p0 }
  0x89   : > { %3603 = shalt.err (!%p3600_p6)
}
  0x8a   : > { %s3604_s23 = scalar_lea.vmem %s4030_s3, 128  ;;  %s3740_s18 = smov [#allocation2]  }
  0x8b   : > { %p3605_p10 = scmp.ne.s32.totalorder %s4030_s3, %s3604_s23  ;;  %s3609_s5 = sshll.u32 %s3740_s18, 4  ;;  %s3610_s5 = int_to_ptr.vmem [resolvable:$false] %s3609_s5 }
  0x8c   : > { %s3611_s25 = scalar_lea.vmem %s3610_s5, 256  ;;  %p3612_p12 = scmp.lt.s32.totalorder %s4030_s3, %s3610_s5 }
  0x8d   : > { %p3607_p3 = pnand %p3605_p10, %p3591_p9  ;;  %p3613_p1 = scmp.lt.s32.totalorder %s3611_s25, %s3604_s23 }
  0x8f   : > { %p3608_p7 = pneg %p3607_p3  ;;  %p3614_p2 = por %p3613_p1, %p3612_p12 }
  0x91   : > { %p3615_p4 = pnand %p3614_p2, %p3608_p7 }
  0x93   : > { %3618 = shalt.err (!%p3615_p4)
}
  0x94   : > { %s3741_s26 = smov 64   ;;  %s3742_s22 = smov 4  }
  0x95   : > { %3406 = dma.hbm_to_vmem [thread:$0]  (!%p4026_p11), %s4024_s29, 128, %s4030_s3, %s4032_s4, %s3741_s26, %s3741_s26, %s3742_s22  }
  0x96   : > { %p4773_p9 = scmp.ne.s32.totalorder %s4764_s24, 0 }
  0x98   : > { %608 = sbr.rel (%p4773_p9) target bundleno = 3132 (0xc3c), region = 92 }
  0x9f   : > { %s4063_s19 = sand.u32 1, %s3721_s30   ;;  %p4774_p0 = scmp.ne.s32.totalorder %s4761_s2, 0 }
  0xa0   : > { %s3043_s0 = sshll.u32 %s4063_s19, 3  ;;  %s611_s23 = scalar_lea.sflag [#allocation3], %s4063_s19 }
  0xa1   : > { %s4067_s18 = scalar_lea.vmem [#allocation2], %s3043_s0 }
  0xa2   : > { %3696 = dma.done.wait (%p4774_p0), %s611_s23, 128  }
  0xa3   : > { %3698 = vsyncadd (%p4774_p0), %s611_s23, 4294967168  ;;  %p4775_p11 = scmp.eq.s32.totalorder %s3882_s1, 0 }
  0xa5   : > { %3700 = dma.done.wait (%p4775_p11), [#allocation6], 1024   ;;  %p4776_p8 = pmov %p4775_p11 }
  0xa7   : > { %3702 = vsyncadd (%p4776_p8), [#allocation6], 4294966272  ;;  %p4777_p13 = pmov %p4776_p8 }
  0xa8   : > { %p4778_p6 = pmov %p4776_p8 }
  0xa9   : > { %3704 = dma.done.wait (%p4777_p13), [#allocation9], 512  }
  0xaa   : > { %3706 = vsyncadd (%p4778_p6), [#allocation9], 4294966784  ;;  %p691_p10 = scmp.lt.s32.totalorder %s3882_s1, 1  ;;  %s4779_s28 = sld [smem:[#allocation27_spill]]  ;;  %v4110_v5 = vld [vmem:[#allocation7] sm:$0xff]  ;;  %v4112_v6 = vld [vmem:[#allocation7 + $0x8] sm:$0xff]  ;;  %v816_v54 = vlaneseq }
  0xab   : > { %s4784_s3 = sld [smem:[#allocation28_spill]]  ;;  %v4114_v7 = vld [vmem:[#allocation7 + $0x10] sm:$0xff]  ;;  %v4116_v8 = vld [vmem:[#allocation7 + $0x18] sm:$0xff]  ;;  %s4786_s9 = sld [smem:[#allocation34_spill]]  ;;  %v4123_v10 = vld [vmem:[#allocation8] sm:$0xff]  ;;  %vm709_vm0 = vcmask 261120  }
  0xac   : > { %s692_s22 = scalar_select %p691_p10, %s3882_s1, 1  ;;  %v4125_v11 = vld [vmem:[#allocation8 + $0x8] sm:$0xff]  ;;  %v4127_v12 = vld [vmem:[#allocation8 + $0x10] sm:$0xff]  ;;  %v4129_v13 = vld [vmem:[#allocation8 + $0x18] sm:$0xff]  ;;  %v3746_v52 = vmov 1983009808  }
  0xad   : > { %v4134_v14 = vld [vmem:[%s4723_s13] ss:$0 sm:$0xff]  ;;  %v4144_v16 = vld [vmem:[%s4724_s14 + $0x8] sm:$0xff]  ;;  %v4149_v17 = vld [vmem:[%s4724_s14 + $0x10] sm:$0xff]  ;;  %s4787_s0 = sld [smem:[#allocation25_spill]]  ;;  %s4788_s10 = sld [smem:[#allocation35_spill]]  ;;  %v814_v53 = vunpack.c.l.s4 %v3746_v52 }
  0xae   : > { %s3108_s26 = sshll.u32 %s692_s22, 4  ;;  %v4139_v15 = vld [vmem:[%s4724_s14] sm:$0xff]  ;;  %v4154_v18 = vld [vmem:[%s4724_s14 + $0x18] sm:$0xff]  ;;  %v4164_v20 = vld [vmem:[%s4724_s14 + $0x28] sm:$0xff]  ;;  %s4789_s6 = sld [smem:[#allocation36_spill]]  ;;  %v817_v58 = vshrl.u32 %v816_v54, 7 }
  0xaf   : > { %v4159_v19 = vld [vmem:[%s4724_s14 + $0x20] sm:$0xff]  ;;  %v4169_v21 = vld [vmem:[%s4724_s14 + $0x30] sm:$0xff]  ;;  %v4174_v22 = vld [vmem:[%s4724_s14 + $0x38] sm:$0xff]  ;;  %s4790_s25 = sld [smem:[#allocation37_spill]]  ;;  %s4792_s29 = sld [smem:[#allocation30_spill]]  ;;  %v815_v57 = vunpack.c.0.s8 %v814_v53 }
  0xb0   : > { %v4087_v0 = vld [vmem:[%s4779_s28] sm:$0xff]  ;;  %v4092_v1 = vld [vmem:[%s4779_s28 + $0x8] sm:$0xff]  ;;  %v4097_v2 = vld [vmem:[%s4779_s28 + $0x10] sm:$0xff]  ;;  %s4791_s2 = sld [smem:[#allocation29_spill]]  ;;  %s3743_s22 = smov 112  }
  0xb1   : > { %4780 = vst [vmem:[#allocation20_spill] sm:$0xff] %v4087_v0  ;;  %4781 = vst [vmem:[#allocation21_spill] sm:$0xff] %v4092_v1  ;;  %v4103_v3 = vld [vmem:[%s4779_s28 + $0x18] sm:$0xff]  ;;  %v4108_v4 = vld [vmem:[%s4784_s3] ss:$0 sm:$0xff]  ;;  %s4793_s3 = sld [smem:[#allocation32_spill]]  ;;  %v4245_v62 = vsub.s32 %v815_v57, %v817_v58 }
  0xb2   : > { %4782 = vst [vmem:[#allocation22_spill] sm:$0xff] %v4097_v2  ;;  %4783 = vst [vmem:[#allocation23_spill] sm:$0xff] %v4103_v3  ;;  %v4121_v9 = vld [vmem:[%s4786_s9] ss:$0 sm:$0xff]  ;;  %v1083_v35 = vld [vmem:[#allocation5] sm:$0xff]  ;;  %s3745_s4 = smov 104  }
  0xb3   : > { %4785 = vst [vmem:[#allocation24_spill] sm:$0xff] %v4108_v4  ;;  %v4179_v23 = vld [vmem:[%s4725_s15] ss:$0 sm:$0xff]  ;;  %s4184_s23 = scalar_lea.vmem %s4787_s0, %s3108_s26  ;;  %v1084_v36 = vld [vmem:[#allocation5 + $0x8] sm:$0xff]  ;;  %v1086_v39 = vld [vmem:[#allocation5 + $0x18] sm:$0xff]  ;;  %s3744_s26 = smov 120  }
  0xb4   : > { %v4189_v24 = vld [vmem:[%s4788_s10] ss:$0 sm:$0xff]  ;;  %v3309_v37 = vpack.c.bf16 %v1084_v36, %v1083_v35  ;;  %v697_v41 = vld [vmem:[%s4184_s23 + $0x8] sm:$0xff]  ;;  %v3747_v55 = vmov 1934713408   ;;  %s4794_s5 = sshll.u32 %s4063_s19, 4 }
  0xb5   : > { %v4194_v25 = vld [vmem:[%s4721_s11] ss:$0 sm:$0xff]  ;;  %v846_v56 = vunpack.c.l.s4 %v3747_v55  ;;  %s4795_s24 = sshll.u32 %s4063_s19, 6  ;;  %s4403_s9 = smov 0  }
  0xb6   : > { %v4199_v26 = vld [vmem:[%s4789_s6] ss:$0 sm:$0xff]  ;;  %v699_v29 = vld [vmem:[%s4791_s2 + $0x8] sm:$0xff]  ;;  %v700_v31 = vld [vmem:[%s4791_s2 + $0x10] sm:$0xff]  ;;  %3310 = vmatprep.subr.bf16.mxu1 %v3309_v37  ;;  %s4397_s6 = scalar_lea.vmem [#allocation10], %s4794_s5  ;;  %s4401_s8 = scalar_lea.vmem [#allocation11], %s4795_s24 }
  0xb7   : > { %v4204_v27 = vld [vmem:[%s4790_s25] ss:$0 sm:$0xff]  ;;  %v701_v32 = vld [vmem:[%s4791_s2 + $0x18] sm:$0xff]  ;;  %3312 = vmatpush3.bf16.msra.mxu1 %v3309_v37  ;;  %v847_v61 = vunpack.c.0.s8 %v846_v56 }
  0xb8   : > { %v698_v28 = vld [vmem:[%s4791_s2] sm:$0xff]  ;;  %v3305_v34 = vpack.c.bf16 %v701_v32, %v700_v31 }
  0xb9   : > { %v3301_v30 = vpack.c.bf16 %v699_v29, %v698_v28  ;;  %v696_v33 = vld [vmem:[%s4184_s23] sm:$0xff] }
  0xba   : > { %3179 = vmatprep.mubr.msk.f32.mxu0 %vm709_vm0, %v696_v33  ;;  %3190 = vmatprep.mubr.msk.f32.mxu1 %vm709_vm0, %v696_v33  ;;  %v1085_v38 = vld [vmem:[#allocation5 + $0x10] sm:$0xff]  ;;  %v4247_v33 = vsub.s32 %v847_v61, %v817_v58 }
  0xbb   : > { %3302 = vmatprep.subr.bf16.mxu0 %v3301_v30  ;;  %v3313_v40 = vpack.c.bf16 %v1086_v39, %v1085_v38  ;;  %v3051_v42 = vld [vmem:[%s4792_s29] ss:$0 sm:$0xff] }
  0xbc   : > { %3304 = vmatpush3.bf16.msra.mxu0 %v3301_v30  ;;  %v3058_v48 = vld [vmem:[%s4793_s3] ss:$0 sm:$0xff] }
  0xbd   : > { %3306 = vmatprep.subr.bf16.mxu0 %v3305_v34  ;;  %3314 = vmatprep.subr.bf16.mxu1 %v3313_v40 }
  0xbe   : > { %3316 = vmatpush3.bf16.msra.mxu1 %v3313_v40 }
  0xc0   : > { %3308 = vmatpush3.bf16.msra.mxu0 %v3305_v34 }
  0xc1   : > { %3191 = vmatmul.mubr.msk.f32.vlgmr.msra.gmra.mrb[0].mxu1 %vm709_vm0, %v697_v41 }
  0xc3   : > { %3180 = vmatmul.mubr.msk.f32.vlgmr.msra.gmra.mrb[0].mxu0 %vm709_vm0, %v697_v41 }
 0x194   : > { %v3192_v46 = vpop.f32.mrb[0].mxu1 }
 0x195   : > { %v1160_v47 = vpop.f32.mrb[1].mxu1  ;;  %v4232_v50 = vadd.f32 %v3192_v46, %v3058_v48 }
 0x196   : > { %v3181_v43 = vpop.f32.mrb[0].mxu0  ;;  %v4237_v51 = vadd.f32 %v3058_v48, %v1160_v47 }
 0x197   : > { %v788_v44 = vadd.f32 %v3181_v43, %v3051_v42  ;;  %v782_v45 = vpop.f32.mrb[1].mxu0 }
 0x198   : > { %v4230_v49 = vadd.f32 %v3051_v42, %v782_v45 }
 0x199   : > { %801 = vrot.lane.b32.xlu1 %v788_v44, %s3743_s22  ;;  %795 = vrot.lane.b32.xlu0 %v788_v44, %s3744_s26 }
 0x19d   : > { %807 = vrot.lane.b32.xlu1 %v788_v44, %s3745_s4  ;;  %793 = vrot.lane.b32.xlu0 %v4230_v49, %s3744_s26 }
 0x1a1   : > { %1173 = vrot.lane.b32.xlu1 %v4232_v50, %s3744_s26  ;;  %805 = vrot.lane.b32.xlu0 %v4230_v49, %s3745_s4 }
 0x1a5   : > { %1179 = vrot.lane.b32.xlu1 %v4232_v50, %s3743_s22  ;;  %1171 = vrot.lane.b32.xlu0 %v4237_v51, %s3744_s26 }
 0x1a9   : > { %799 = vrot.lane.b32.xlu1 %v4230_v49, %s3743_s22  ;;  %1177 = vrot.lane.b32.xlu0 %v4237_v51, %s3743_s22 }
 0x1ad   : > { %1185 = vrot.lane.b32.xlu1 %v4232_v50, %s3745_s4  ;;  %1183 = vrot.lane.b32.xlu0 %v4237_v51, %s3745_s4 }
 0x20b   : > { %v802_v59 = vpop.permute.xlu1 %801  ;;  %v796_v60 = vpop.permute.xlu0 %795 }
 0x20c   : > { %v879_v63 = vcombine.low %v788_v44, %v802_v59  ;;  %v880_v28 = vcombine.high %v788_v44, %v802_v59 }
 0x20e   : > { %v887_v34 = vrot.slane %v879_v63, %v4245_v62  ;;  %v894_v35 = vrot.slane %v880_v28, %v4245_v62 }
 0x20f   : > { %v808_v29 = vpop.permute.xlu1 %807  ;;  %v794_v30 = vpop.permute.xlu0 %793 }
 0x210   : > { %v895_v31 = vcombine.low %v796_v60, %v808_v29  ;;  %v896_v32 = vcombine.high %v796_v60, %v808_v29 }
 0x212   : > { %v903_v36 = vrot.slane %v895_v31, %v4245_v62  ;;  %v910_v37 = vrot.slane %v896_v32, %v4245_v62 }
 0x213   : > { %v4253_v38 = vpop.permute.xlu1 %1173  ;;  %v806_v39 = vpop.permute.xlu0 %805 }
 0x214   : > { %v911_v40 = vcombine.low %v887_v34, %v903_v36  ;;  %v912_v41 = vcombine.high %v887_v34, %v903_v36  ;;  %v927_v42 = vcombine.low %v894_v35, %v910_v37  ;;  %v928_v43 = vcombine.high %v894_v35, %v910_v37 }
 0x215   : > { %v827_v48 = vcombine.low %v794_v30, %v806_v39  ;;  %v828_v52 = vcombine.high %v794_v30, %v806_v39 }
 0x216   : > { %v919_v44 = vrot.slane %v911_v40, %v4247_v33  ;;  %v926_v45 = vrot.slane %v912_v41, %v4247_v33  ;;  %v935_v46 = vrot.slane %v927_v42, %v4247_v33  ;;  %v942_v47 = vrot.slane %v928_v43, %v4247_v33 }
 0x217   : > { %v1180_v53 = vpop.permute.xlu1 %1179  ;;  %v1172_v54 = vpop.permute.xlu0 %1171  ;;  %v835_v30 = vrot.slane %v827_v48, %v4245_v62  ;;  %v842_v31 = vrot.slane %v828_v52, %v4245_v62 }
 0x218   : > { %v1015_v55 = vcombine.low %v919_v44, %v926_v45  ;;  %v3056_v56 = vcombine.high %v919_v44, %v926_v45  ;;  %v1031_v57 = vcombine.low %v935_v46, %v942_v47  ;;  %v3057_v58 = vcombine.high %v935_v46, %v942_v47 }
 0x219   : > { %v1257_v59 = vcombine.low %v4232_v50, %v1180_v53  ;;  %v1258_v60 = vcombine.high %v4232_v50, %v1180_v53 }
 0x21a   : > { %v1022_v61 = vrot.slane %v1015_v55, %v4245_v62  ;;  %v1030_v63 = vrot.slane %v3056_v56, %v4245_v62  ;;  %v1038_v28 = vrot.slane %v1031_v57, %v4245_v62  ;;  %v1046_v29 = vrot.slane %v3057_v58, %v4245_v62 }
 0x21b   : > { %v1265_v32 = vrot.slane %v1257_v59, %v4245_v62  ;;  %v1272_v34 = vrot.slane %v1258_v60, %v4245_v62  ;;  %v800_v35 = vpop.permute.xlu1 %799  ;;  %v1178_v36 = vpop.permute.xlu0 %1177 }
 0x21c   : > { %v1047_v37 = vcombine.low %v1022_v61, %v1030_v63  ;;  %v1048_v50 = vcombine.high %v1022_v61, %v1030_v63  ;;  %v1063_v39 = vcombine.low %v1038_v28, %v1046_v29  ;;  %v1064_v40 = vcombine.high %v1038_v28, %v1046_v29 }
 0x21d   : > { %v811_v41 = vcombine.low %v4230_v49, %v800_v35  ;;  %v812_v42 = vcombine.high %v4230_v49, %v800_v35  ;;  %v1189_v43 = vcombine.low %v4237_v51, %v1178_v36  ;;  %v1190_v44 = vcombine.high %v4237_v51, %v1178_v36 }
 0x21e   : > { %v4274_v45 = vrot.slane %v1047_v37, %v4247_v33  ;;  %v4277_v46 = vrot.slane %v1048_v50, %v4247_v33  ;;  %v4280_v47 = vrot.slane %v1063_v39, %v4247_v33  ;;  %v4283_v48 = vrot.slane %v1064_v40, %v4247_v33 }
 0x21f   : > { %v819_v52 = vrot.slane %v811_v41, %v4245_v62  ;;  %v826_v49 = vrot.slane %v812_v42, %v4245_v62  ;;  %v4288_v53 = vrot.slane %v1189_v43, %v4245_v62  ;;  %v4291_v51 = vrot.slane %v1190_v44, %v4245_v62  ;;  %v1186_v55 = vpop.permute.xlu1 %1185  ;;  %v1184_v56 = vpop.permute.xlu0 %1183 }
 0x220   : > { %v1273_v35 = vcombine.low %v4253_v38, %v1186_v55  ;;  %v1274_v36 = vcombine.high %v4253_v38, %v1186_v55  ;;  %v1205_v37 = vcombine.low %v1172_v54, %v1184_v56  ;;  %v1206_v50 = vcombine.high %v1172_v54, %v1184_v56 }
 0x221   : > { %v843_v61 = vcombine.low %v819_v52, %v835_v30  ;;  %v844_v63 = vcombine.high %v819_v52, %v835_v30  ;;  %v859_v28 = vcombine.low %v826_v49, %v842_v31  ;;  %v860_v29 = vcombine.high %v826_v49, %v842_v31 }
 0x222   : > { %v1281_v43 = vrot.slane %v1273_v35, %v4245_v62  ;;  %v1288_v30 = vrot.slane %v1274_v36, %v4245_v62  ;;  %v1213_v31 = vrot.slane %v1205_v37, %v4245_v62  ;;  %v1220_v44 = vrot.slane %v1206_v50, %v4245_v62 }
 0x223   : > { %v851_v39 = vrot.slane %v843_v61, %v4247_v33  ;;  %v858_v40 = vrot.slane %v844_v63, %v4247_v33  ;;  %v867_v41 = vrot.slane %v859_v28, %v4247_v33  ;;  %v874_v42 = vrot.slane %v860_v29, %v4247_v33 }
 0x224   : > { %v1289_v55 = vcombine.low %v1265_v32, %v1281_v43  ;;  %v1290_v56 = vcombine.high %v1265_v32, %v1281_v43  ;;  %v1305_v61 = vcombine.low %v1272_v34, %v1288_v30  ;;  %v1306_v63 = vcombine.high %v1272_v34, %v1288_v30 }
 0x225   : > { %v947_v52 = vcombine.low %v851_v39, %v858_v40  ;;  %v3054_v38 = vcombine.high %v851_v39, %v858_v40  ;;  %v963_v49 = vcombine.low %v867_v41, %v874_v42  ;;  %v3055_v54 = vcombine.high %v867_v41, %v874_v42 }
 0x226   : > { %v1297_v37 = vrot.slane %v1289_v55, %v4247_v33  ;;  %v1304_v50 = vrot.slane %v1290_v56, %v4247_v33  ;;  %v1313_v39 = vrot.slane %v1305_v61, %v4247_v33  ;;  %v1320_v40 = vrot.slane %v1306_v63, %v4247_v33 }
 0x227   : > { %v954_v28 = vrot.slane %v947_v52, %v4245_v62  ;;  %v962_v29 = vrot.slane %v3054_v38, %v4245_v62  ;;  %v970_v35 = vrot.slane %v963_v49, %v4245_v62  ;;  %v978_v36 = vrot.slane %v3055_v54, %v4245_v62 }
 0x228   : > { %v1393_v43 = vcombine.low %v1297_v37, %v1304_v50  ;;  %v3063_v30 = vcombine.high %v1297_v37, %v1304_v50  ;;  %v1409_v52 = vcombine.low %v1313_v39, %v1320_v40  ;;  %v3064_v38 = vcombine.high %v1313_v39, %v1320_v40 }
 0x229   : > { %v979_v41 = vcombine.low %v954_v28, %v962_v29  ;;  %v980_v32 = vcombine.high %v954_v28, %v962_v29  ;;  %v995_v42 = vcombine.low %v970_v35, %v978_v36  ;;  %v996_v34 = vcombine.high %v970_v35, %v978_v36 }
 0x22a   : > { %v1400_v61 = vrot.slane %v1393_v43, %v4245_v62  ;;  %v1408_v63 = vrot.slane %v3063_v30, %v4245_v62  ;;  %v1416_v28 = vrot.slane %v1409_v52, %v4245_v62  ;;  %v1424_v29 = vrot.slane %v3064_v38, %v4245_v62 }
 0x22b   : > { %v4320_v49 = vrot.slane %v979_v41, %v4247_v33  ;;  %v4323_v54 = vrot.slane %v980_v32, %v4247_v33  ;;  %v4326_v55 = vrot.slane %v995_v42, %v4247_v33  ;;  %v4329_v56 = vrot.slane %v996_v34, %v4247_v33 }
 0x22c   : > { %v1425_v39 = vcombine.low %v1400_v61, %v1408_v63  ;;  %v1426_v40 = vcombine.high %v1400_v61, %v1408_v63  ;;  %v1441_v41 = vcombine.low %v1416_v28, %v1424_v29  ;;  %v1442_v32 = vcombine.high %v1416_v28, %v1424_v29 }
 0x22d   : > { %v1221_v42 = vcombine.low %v4288_v53, %v1213_v31  ;;  %v1222_v34 = vcombine.high %v4288_v53, %v1213_v31  ;;  %v1237_v43 = vcombine.low %v4291_v51, %v1220_v44  ;;  %v1238_v30 = vcombine.high %v4291_v51, %v1220_v44 }
 0x22e   : > { %v4348_v52 = vrot.slane %v1425_v39, %v4247_v33  ;;  %v4351_v38 = vrot.slane %v1426_v40, %v4247_v33  ;;  %v4354_v60 = vrot.slane %v1441_v41, %v4247_v33  ;;  %v4357_v61 = vrot.slane %v1442_v32, %v4247_v33 }
 0x22f   : > { %v1229_v63 = vrot.slane %v1221_v42, %v4247_v33  ;;  %v1236_v53 = vrot.slane %v1222_v34, %v4247_v33  ;;  %v1245_v31 = vrot.slane %v1237_v43, %v4247_v33  ;;  %v1252_v51 = vrot.slane %v1238_v30, %v4247_v33 }
 0x231   : > { %v1325_v40 = vcombine.low %v1229_v63, %v1236_v53  ;;  %v3061_v41 = vcombine.high %v1229_v63, %v1236_v53  ;;  %v1341_v32 = vcombine.low %v1245_v31, %v1252_v51  ;;  %v3062_v42 = vcombine.high %v1245_v31, %v1252_v51 }
 0x233   : > { %v1332_v34 = vrot.slane %v1325_v40, %v4245_v62  ;;  %v1340_v43 = vrot.slane %v3061_v41, %v4245_v62  ;;  %v1348_v30 = vrot.slane %v1341_v32, %v4245_v62  ;;  %v1356_v28 = vrot.slane %v3062_v42, %v4245_v62 }
 0x235   : > { %v1357_v44 = vcombine.low %v1332_v34, %v1340_v43  ;;  %v1358_v50 = vcombine.high %v1332_v34, %v1340_v43  ;;  %v1373_v29 = vcombine.low %v1348_v30, %v1356_v28  ;;  %v1374_v59 = vcombine.high %v1348_v30, %v1356_v28 }
 0x237   : > { %v4376_v39 = vrot.slane %v1357_v44, %v4247_v33  ;;  %v4379_v63 = vrot.slane %v1358_v50, %v4247_v33  ;;  %v4382_v53 = vrot.slane %v1373_v29, %v4247_v33  ;;  %v4385_v31 = vrot.slane %v1374_v59, %v4247_v33 }
 0x238 LB: >> { %v4796_v0 = vld [vmem:[#allocation20_spill] sm:$0xff]  ;;  %v4797_v1 = vld [vmem:[#allocation21_spill] sm:$0xff]  ;;  %v4742_v50 = vmov 0.0|0.0   ;;  %v4798_v2 = vld [vmem:[#allocation22_spill] sm:$0xff]  ;;  %vm3749_vm1 = vmmov 0   ;;  %v4740_v41 = vmov 0.0   ;;  %v4801_v35 = vcombine.low %v4320_v49, %v4326_v55  ;;  %s3733_s9 = sphi %s4403_s9, %s1494_s9  }
 0x239   : >> { %v3318_v59 = vpack.c.bf16 %v4797_v1, %v4796_v0  ;;  %3317 = vmatprep.subr.bf16.mxu1 %v4742_v50  ;;  %3327 = vmatprep.subr.bf16.mxu0 %v4742_v50  ;;  %v4799_v3 = vld [vmem:[#allocation23_spill] sm:$0xff]  ;;  %s4417_s29 = sshll.u32 %s3733_s9, 3  ;;  %v4800_v4 = vld [vmem:[#allocation24_spill] sm:$0xff]  ;;  %vm1730_vm2 = vcmask 64512   ;;  %v4802_v57 = vcombine.low %v4274_v45, %v4280_v47  ;;  %v4803_v36 = vcombine.high %v4320_v49, %v4326_v55  ;;  %s3751_s26 = smov 104  }
 0x23a   : >> { %v3321_v29 = vpack.c.bf16 %v4799_v3, %v4798_v2  ;;  %3201 = vmatprep.mubr.msk.f32.mxu1 %vm3749_vm1, %v4740_v41  ;;  %s1496_s22 = scalar_lea.vmem %s4184_s23, %s4417_s29  ;;  %3215 = vmatprep.mubr.msk.f32.mxu0 %vm3749_vm1, %v4740_v41  ;;  %v4804_v58 = vcombine.high %v4274_v45, %v4280_v47  ;;  %s3752_s25 = smov 120   ;;  %vm4446_vm3 = vmpackc.low %vm1730_vm2, %vm1730_vm2  ;;  %vm2047_vm4 = vcmask 130048   ;;  %vm2539_vm5 = vcmask 195584  }
 0x23b   : >> { %3319 = vmatpush3.bf16.msra.mxu1 %v3318_v59  ;;  %v4424_v32 = vld [vmem:[%s1496_s22] sm:$0xff]  ;;  %v3324_v59 = vpack.c.bf16 %v4802_v57, %v4801_v35  ;;  %s3753_s0 = smov 112   ;;  %s1724_s3 = sshra.s32 %s4417_s29, 3  ;;  %vm2735_vm6 = vcmask 523264  }
 0x23c   : >> { %3320 = vmatprep.subr.bf16.mxu1 %v4742_v50  ;;  %s3070_s4 = sshll.u32 %s1724_s3, 2  ;;  %s2092_s24 = scalar_lea.vmem %s4401_s8, %s4417_s29 [#allocation11] }
 0x23d   : >> { %s1727_s5 = scalar_lea.vmem %s4067_s18, %s3070_s4 [#allocation2]  ;;  %s3754_s22 = smov 16  }
 0x23e   : >> { %s1494_s9 = sadd.s32 1, %s3733_s9  }
 0x23f   : >> { %3322 = vmatpush3.bf16.msra.mxu1 %v3321_v29  ;;  %v3328_v29 = vpack.c.bf16 %v4804_v58, %v4803_v36  ;;  %p1491_p3 = scmp.ge.s32.totalorder %s1494_s9, 2  }
 0x240   : >> { %3323 = vmatprep.subr.bf16.mxu1 %v4742_v50  ;;  %s3109_s3 = sshll.u32 (%p1491_p3), %s3882_s1, 8  ;;  %s3757_s18 = smov (%p1491_p3), [#allocation10]  }
 0x241   : >> { %3330 = vmatpush3.bf16.xpose.msk.msra.mxu0 %vm4446_vm3, %v3328_v29  ;;  %s3623_s23 = sshll.u32 (%p1491_p3), %s3757_s18, 4  ;;  %s3624_s23 = int_to_ptr.vmem [resolvable:$false] %s3623_s23 }
 0x242   : >> { %3202 = vmatmul.mubr.msk.f32.vlgmr.msra.gmra.mrb[0].mxu1 %vm709_vm0, %v4424_v32  ;;  %3335 = vmatprep.subr.bf16.mxu0 %v4742_v50  ;;  %s3625_s9 = scalar_lea.vmem (%p1491_p3), %s3624_s23, 512 }
 0x243   : >> { %3208 = vmatprep.mubr.msk.f32.mxu1 %vm3749_vm1, %v4740_v41 }
 0x248   : >> { %3326 = vmatpush3.bf16.xpose.msk.msra.mxu1 %vm4446_vm3, %v3324_v59 }
 0x249   : >> { %3331 = vmatprep.subr.bf16.mxu1 %v4742_v50 }
 0x315   : >> { %v1573_v42 = vpop.f32.mrb[0].mxu1 }
 0x316   : >> { %v1574_v34 = vadd.f32 %v4800_v4, %v1573_v42  ;;  %v3203_v43 = vpop.f32.mrb[1].mxu1  ;;  %v1728_v42 = vld [vmem:[%s1727_s5] sm:$0xf] }
 0x318   : >> { %v1577_v30 = vmul.f32 0.35355338, %v1574_v34 }
 0x31a   : >> { %1585 = vrot.lane.b32.xlu1 %v1577_v30, %s3751_s26  ;;  %1579 = vrot.lane.b32.xlu0 %v1577_v30, %s3752_s25  ;;  %s3755_s26 = smov 8   ;;  %s3756_s25 = smov 24  }
 0x31e   : >> { %1582 = vrot.lane.b32.xlu0 %v1577_v30, %s3753_s0  ;;  %s2837_s0 = scalar_lea.vmem %s4397_s6, %s4417_s29 [#allocation10]  ;;  %s2858_s29 = sshll.u32 (%p1491_p3), %s4397_s6, 4  ;;  %s4627_s29 = int_to_ptr.vmem [resolvable:$true] %s2858_s29 }
 0x31f   : > { %p3626_p2 = scmp.lt.s32.totalorder (%p1491_p3), %s4627_s29, %s3624_s23 }
 0x38c   : >> { %v1586_v34 = vpop.permute.xlu1 %1585  ;;  %v1580_v43 = vpop.permute.xlu0 %1579 }
 0x38d   : >> { %v1604_v35 = vcombine.low %v1580_v43, %v1586_v34  ;;  %v1605_v36 = vcombine.high %v1580_v43, %v1586_v34 }
 0x38f   : >> { %v1612_v40 = vrot.slane %v1604_v35, %v4245_v62  ;;  %v1619_v59 = vrot.slane %v1605_v36, %v4245_v62 }
 0x390   : >> { %v1583_v57 = vpop.permute.xlu0 %1582 }
 0x391   : >> { %v1588_v58 = vcombine.low %v1577_v30, %v1583_v57  ;;  %v1589_v44 = vcombine.high %v1577_v30, %v1583_v57 }
 0x393   : >> { %v1596_v28 = vrot.slane %v1588_v58, %v4245_v62  ;;  %v1603_v29 = vrot.slane %v1589_v44, %v4245_v62 }
 0x395   : >> { %v1620_v51 = vcombine.low %v1596_v28, %v1612_v40  ;;  %v1621_v41 = vcombine.high %v1596_v28, %v1612_v40  ;;  %v1636_v50 = vcombine.low %v1603_v29, %v1619_v59  ;;  %v1637_v37 = vcombine.high %v1603_v29, %v1619_v59 }
 0x396   : >> { %v4809_v29 = vcombine.high %v4323_v54, %v4329_v56 }
 0x397   : >> { %v1628_v0 = vrot.slane %v1620_v51, %v4247_v33  ;;  %v1635_v1 = vrot.slane %v1621_v41, %v4247_v33  ;;  %v1644_v34 = vrot.slane %v1636_v50, %v4247_v33  ;;  %v1651_v57 = vrot.slane %v1637_v37, %v4247_v33 }
 0x398   : >> { %v4807_v37 = vcombine.low %v4323_v54, %v4329_v56 }
 0x399   : >> { %v1656_v30 = vcombine.low %v1628_v0, %v1635_v1  ;;  %v3068_v35 = vcombine.high %v1628_v0, %v1635_v1  ;;  %v1672_v43 = vcombine.low %v1644_v34, %v1651_v57  ;;  %v3069_v36 = vcombine.high %v1644_v34, %v1651_v57 }
 0x39a   : >> { %v4808_v0 = vcombine.low %v4277_v46, %v4283_v48  ;;  %v4810_v34 = vcombine.high %v4277_v46, %v4283_v48 }
 0x39b   : >> { %v1663_v58 = vrot.slane %v1656_v30, %v4245_v62  ;;  %v1671_v44 = vrot.slane %v3068_v35, %v4245_v62  ;;  %v1679_v40 = vrot.slane %v1672_v43, %v4245_v62  ;;  %v1687_v28 = vrot.slane %v3069_v36, %v4245_v62 }
 0x39c   : >> { %v3332_v1 = vpack.c.bf16 %v4808_v0, %v4807_v37  ;;  %v3336_v57 = vpack.c.bf16 %v4810_v34, %v4809_v29 }
 0x39d   : >> { %v1688_v59 = vcombine.low %v1663_v58, %v1671_v44  ;;  %v1704_v51 = vcombine.low %v1679_v40, %v1687_v28  ;;  %v1689_v30 = vcombine.high %v1663_v58, %v1671_v44  ;;  %v1705_v35 = vcombine.high %v1679_v40, %v1687_v28 }
 0x39e   : >> { %v4811_v58 = vmov 0.0   ;;  %v4812_v44 = vmov 0.0|0.0  }
 0x39f   : >> { %v1696_v41 = vrot.slane %v1688_v59, %v4247_v33  ;;  %v1712_v50 = vrot.slane %v1704_v51, %v4247_v33  ;;  %v1703_v59 = vrot.slane %v1689_v30, %v4247_v33  ;;  %v1719_v51 = vrot.slane %v1705_v35, %v4247_v33 }
 0x3a1   : >> { %v1720_v43 = vcombine.low %v1696_v41, %v1712_v50  ;;  %v1721_v36 = vcombine.high %v1696_v41, %v1712_v50  ;;  %v1722_v40 = vcombine.low %v1703_v59, %v1719_v51  ;;  %v1723_v28 = vcombine.high %v1703_v59, %v1719_v51 }
 0x3a2   : >> { %v1729_v41 = vunpack.c.l.bf16 %v1728_v42 }
 0x3a3   : >> { %3209 = vmatmul.mubr.msk.f32.vlgmr.msra.gmra.mrb[2].mxu1 %vm1730_vm2, %v1720_v43  ;;  %3216 = vmatmul.mubr.msk.f32.vlgmr.msra.gmra.mrb[0].mxu0 %vm1730_vm2, %v1721_v36 }
 0x3a4   : >> { %3334 = vmatpush3.bf16.xpose.msk.msra.mxu1 %vm4446_vm3, %v3332_v1  ;;  %3338 = vmatpush3.bf16.xpose.msk.msra.mxu0 %vm4446_vm3, %v3336_v57 }
 0x3a5   : >> { %3222 = vmatprep.mubr.msk.f32.mxu1 %vm3749_vm1, %v4811_v58  ;;  %3229 = vmatprep.mubr.msk.f32.mxu0 %vm3749_vm1, %v4811_v58 }
 0x3a6   : >> { %3339 = vmatprep.subr.bf16.mxu1 %v4812_v44  ;;  %3345 = vmatprep.subr.bf16.mxu0 %v4812_v44 }
 0x3ab   : >> { %3223 = vmatmul.mubr.msk.f32.vlgmr.msra.gmra.mrb[4].mxu1 %vm1730_vm2, %v1722_v40  ;;  %3230 = vmatmul.mubr.msk.f32.vlgmr.msra.gmra.mrb[2].mxu0 %vm1730_vm2, %v1723_v28 }
 0x3ac   : >> { %3236 = vmatprep.mubr.msk.f32.mxu1 %vm3749_vm1, %v4811_v58  ;;  %3250 = vmatprep.mubr.msk.f32.mxu0 %vm3749_vm1, %v4811_v58 }
 0x476   : >> { %v1806_v50 = vpop.f32.mrb[2].mxu1  ;;  %v1885_v37 = vpop.f32.mrb[0].mxu0 }
 0x477   : >> { %v1807_v0 = vadd.f32 %v1806_v50, %v1729_v41  ;;  %v1886_v1 = vadd.f32 %v1885_v37, %v1729_v41  ;;  %v3210_v29 = vpop.f32.mrb[3].mxu1  ;;  %v3217_v34 = vpop.f32.mrb[1].mxu0 }
 0x479   : >> { %v2051_v57 = vsel %vm2047_vm4, %v1886_v1, -inf  ;;  %v2048_v30 = vsel %vm2047_vm4, %v1807_v0, -inf }
 0x47a   : >> { %2052 = vmax.xlane.f32.xlu0 %v2051_v57  ;;  %2049 = vmax.xlane.f32.xlu1 %v2048_v30 }
 0x47e   : >> { %v1964_v35 = vpop.f32.mrb[4].mxu1  ;;  %v2043_v43 = vpop.f32.mrb[2].mxu0 }
 0x47f   : >> { %v1965_v36 = vadd.f32 %v1964_v35, %v1729_v41  ;;  %v2044_v59 = vadd.f32 %v2043_v43, %v1729_v41  ;;  %v3224_v51 = vpop.f32.mrb[5].mxu1  ;;  %v3231_v40 = vpop.f32.mrb[3].mxu0 }
 0x481   : >> { %v2057_v28 = vsel %vm2047_vm4, %v2044_v59, -inf  ;;  %v2054_v42 = vsel %vm2047_vm4, %v1965_v36, -inf }
 0x482   : >> { %2058 = vmax.xlane.f32.xlu1 %v2057_v28  ;;  %2055 = vmax.xlane.f32.xlu0 %v2054_v42 }
 0x507   : >> { %v2053_v50 = vpop.xlane.xlu0 %2052  ;;  %v2050_v37 = vpop.xlane.xlu1 %2049 }
 0x508   : >> { %v2061_v29 = vsub.f32 %v1886_v1, %v2053_v50  ;;  %v2060_v34 = vsub.f32 %v1807_v0, %v2050_v37  ;;  %v4815_v37 = vcombine.low %v4379_v63, %v4385_v31 }
 0x50a   : >> { %v2066_v2 = vmul.f32 1.442695, %v2061_v29  ;;  %v2064_v3 = vmul.f32 1.442695, %v2060_v34  ;;  %v4816_v29 = vcombine.low %v4351_v38, %v4357_v61 }
 0x50c   : >> { %3485 = vpow2.f32 %v2066_v2  ;;  %v3346_v34 = vpack.c.bf16 %v4816_v29, %v4815_v37 }
 0x50d   : >> { %3487 = vpow2.f32 %v2064_v3 }
 0x50e   : >> { %3347 = vmatpush3.bf16.msra.mxu0 %v3346_v34 }
 0x50f   : >> { %v2059_v57 = vpop.xlane.xlu1 %2058  ;;  %v2056_v30 = vpop.xlane.xlu0 %2055  ;;  %3351 = vmatprep.subr.bf16.mxu0 %v4812_v44 }
 0x510   : >> { %v2063_v35 = vsub.f32 %v2044_v59, %v2059_v57  ;;  %v2062_v41 = vsub.f32 %v1965_v36, %v2056_v30  ;;  %v4813_v36 = vcombine.low %v4376_v39, %v4382_v53  ;;  %v4814_v59 = vcombine.low %v4348_v52, %v4354_v60 }
 0x512   : >> { %v2070_v43 = vmul.f32 1.442695, %v2063_v35  ;;  %v2068_v51 = vmul.f32 1.442695, %v2062_v41  ;;  %v3340_v50 = vpack.c.bf16 %v4814_v59, %v4813_v36  ;;  %v4820_v59 = vcombine.high %v4351_v38, %v4357_v61 }
 0x514   : >> { %3489 = vpow2.f32 %v2070_v43  ;;  %3341 = vmatpush3.bf16.msra.mxu1 %v3340_v50 }
 0x515   : >> { %3491 = vpow2.f32 %v2068_v51  ;;  %3342 = vmatprep.subr.bf16.mxu1 %v4812_v44 }
 0x516   : >> { %v3486_v40 = vpop.eup %3485 }
 0x517   : >> { %v3488_v4 = vpop.eup %3487  ;;  %v2075_v28 = vsel %vm2047_vm4, %v3486_v40, 0.0 }
 0x518   : >> { %2076 = vadd.xlane.f32.xlu1 %v2075_v28  ;;  %v2072_v1 = vsel %vm2047_vm4, %v3488_v4, 0.0 }
 0x519   : >> { %2073 = vadd.xlane.f32.xlu0 %v2072_v1  ;;  %v4817_v1 = vcombine.high %v4376_v39, %v4382_v53 }
 0x51e   : >> { %v3490_v0 = vpop.eup %3489 }
 0x51f   : >> { %v3492_v42 = vpop.eup %3491  ;;  %v2081_v2 = vsel %vm2047_vm4, %v3490_v0, 0.0 }
 0x520   : >> { %2082 = vadd.xlane.f32.xlu1 %v2081_v2  ;;  %v2078_v3 = vsel %vm2047_vm4, %v3492_v42, 0.0  ;;  %v4818_v2 = vcombine.high %v4348_v52, %v4354_v60 }
 0x521   : >> { %2079 = vadd.xlane.f32.xlu0 %v2078_v3 }
 0x522   : >> { %v3343_v3 = vpack.c.bf16 %v4818_v2, %v4817_v1 }
 0x5a5   : >> { %v2077_v57 = vpop.xlane.xlu1 %2076 }
 0x5a6   : >> { %3493 = vrcp.f32 %v2077_v57  ;;  %v2074_v30 = vpop.xlane.xlu0 %2073 }
 0x5a7   : >> { %3495 = vrcp.f32 %v2074_v30 }
 0x5ad   : >> { %v2083_v35 = vpop.xlane.xlu1 %2082 }
 0x5ae   : >> { %3497 = vrcp.f32 %v2083_v35  ;;  %v2080_v41 = vpop.xlane.xlu0 %2079 }
 0x5af   : >> { %3499 = vrcp.f32 %v2080_v41 }
 0x5b0   : >> { %v3494_v43 = vpop.eup %3493 }
 0x5b1   : >> { %v3496_v51 = vpop.eup %3495  ;;  %v2089_v28 = vmul.f32 %v3494_v43, %v3486_v40  ;;  %v4819_v40 = vcombine.high %v4379_v63, %v4385_v31 }
 0x5b2   : >> { %v2088_v36 = vmul.f32 %v3496_v51, %v3488_v4 }
 0x5b3   : >> { %2094 = vst.msk [vmem:[%s2092_s24 + $0x10] sm:$0xff] %vm2047_vm4, %v2089_v28  ;;  %v3349_v50 = vpack.c.bf16 %v4820_v59, %v4819_v40 }
 0x5b4   : >> { %2093 = vst.msk [vmem:[%s2092_s24] sm:$0xff] %vm2047_vm4, %v2088_v36  ;;  %3237 = vmatmul.mubr.msk.f32.vlgmr.msra.gmra.mrb[6].mxu1 %vm2047_vm4, %v2088_v36 }
 0x5b5   : >> { %3344 = vmatpush3.bf16.msra.mxu1 %v3343_v3  ;;  %3243 = vmatprep.mubr.msk.f32.mxu1 %vm3749_vm1, %v4811_v58 }
 0x5b6   : >> { %3348 = vmatprep.subr.bf16.mxu1 %v4812_v44 }
 0x5b8   : >> { %v3498_v4 = vpop.eup %3497  ;;  %3244 = vmatmul.mubr.msk.f32.vlgmr.msra.gmra.mrb[8].mxu1 %vm2047_vm4, %v2089_v28 }
 0x5b9   : >> { %v3500_v37 = vpop.eup %3499  ;;  %v2091_v29 = vmul.f32 %v3498_v4, %v3490_v0  ;;  %3350 = vmatpush3.bf16.msra.mxu1 %v3349_v50  ;;  %3257 = vmatprep.mubr.msk.f32.mxu1 %vm3749_vm1, %v4811_v58  ;;  %v3352_v0 = vpack.c.bf16 %v4112_v6, %v4110_v5 }
 0x5ba   : >> { %v2090_v34 = vmul.f32 %v3500_v37, %v3492_v42  ;;  %3357 = vmatprep.subr.bf16.mxu1 %v4812_v44 }
 0x5bb   : >> { %2096 = vst.msk [vmem:[%s2092_s24 + $0x30] sm:$0xff] %vm2047_vm4, %v2091_v29 }
 0x5bc   : >> { %2095 = vst.msk [vmem:[%s2092_s24 + $0x20] sm:$0xff] %vm2047_vm4, %v2090_v34  ;;  %3251 = vmatmul.mubr.msk.f32.vlgmr.msra.gmra.mrb[4].mxu0 %vm2047_vm4, %v2090_v34  ;;  %3258 = vmatmul.mubr.msk.f32.vlgmr.msra.gmra.mrb[10].mxu1 %vm2047_vm4, %v2091_v29  ;;  %s4821_s24 = sld [smem:[#allocation38_spill]] (%p1491_p3) }
 0x5bd   : >> { %3268 = vmatprep.mubr.msk.f32.mxu0 %vm3749_vm1, %v4811_v58  ;;  %3279 = vmatprep.mubr.msk.f32.mxu1 %vm3749_vm1, %v4811_v58 }
 0x5be   : >> { %3353 = vmatpush3.bf16.msra.mxu0 %v3352_v0 }
 0x5bf   : >> { %3354 = vmatprep.subr.bf16.mxu0 %v4812_v44 }
 0x687   : >> { %v2166_v42 = vpop.f32.mrb[6].mxu1 }
 0x688   : >> { %v3238_v57 = vpop.f32.mrb[7].mxu1 }
 0x689   : >> { %v3355_v57 = vpack.c.bf16 %v4116_v8, %v4114_v7 }
 0x68b   : >> { %v2239_v30 = vpop.f32.mrb[8].mxu1  ;;  %3356 = vmatpush3.bf16.msra.mxu0 %v3355_v57 }
 0x68c   : >> { %v3245_v35 = vpop.f32.mrb[9].mxu1  ;;  %3363 = vmatprep.subr.bf16.mxu0 %v4812_v44 }
 0x68f   : >> { %v2312_v41 = vpop.f32.mrb[4].mxu0  ;;  %v2385_v43 = vpop.f32.mrb[10].mxu1 }
 0x690   : >> { %v2389_v51 = vcombine.low %v2166_v42, %v2312_v41  ;;  %v2390_v28 = vcombine.high %v2166_v42, %v2312_v41  ;;  %v3252_v1 = vpop.f32.mrb[5].mxu0  ;;  %v2405_v2 = vcombine.low %v2239_v30, %v2385_v43  ;;  %v2406_v3 = vcombine.high %v2239_v30, %v2385_v43  ;;  %v3259_v36 = vpop.f32.mrb[11].mxu1 }
 0x692   : >> { %v2397_v40 = vrot.slane %v2389_v51, %v4245_v62  ;;  %v2404_v59 = vrot.slane %v2390_v28, %v4245_v62  ;;  %v2413_v50 = vrot.slane %v2405_v2, %v4245_v62  ;;  %v2420_v4 = vrot.slane %v2406_v3, %v4245_v62 }
 0x694   : >> { %v2421_v37 = vcombine.low %v2397_v40, %v2413_v50  ;;  %v2422_v29 = vcombine.high %v2397_v40, %v2413_v50  ;;  %v2437_v34 = vcombine.low %v2404_v59, %v2420_v4  ;;  %v2438_v0 = vcombine.high %v2404_v59, %v2420_v4 }
 0x696   : >> { %v2429_v42 = vrot.slane %v2421_v37, %v4247_v33  ;;  %v2436_v30 = vrot.slane %v2422_v29, %v4247_v33  ;;  %v2445_v35 = vrot.slane %v2437_v34, %v4247_v33  ;;  %v2452_v41 = vrot.slane %v2438_v0, %v4247_v33 }
 0x698   : >> { %v2457_v43 = vcombine.low %v2429_v42, %v2436_v30  ;;  %v3087_v51 = vcombine.high %v2429_v42, %v2436_v30  ;;  %v2473_v28 = vcombine.low %v2445_v35, %v2452_v41  ;;  %v3088_v1 = vcombine.high %v2445_v35, %v2452_v41 }
 0x69a   : >> { %v2464_v2 = vrot.slane %v2457_v43, %v4245_v62  ;;  %v2472_v3 = vrot.slane %v3087_v51, %v4245_v62  ;;  %v2480_v36 = vrot.slane %v2473_v28, %v4245_v62  ;;  %v2488_v40 = vrot.slane %v3088_v1, %v4245_v62 }
 0x69c   : >> { %v2490_v59 = vcombine.high %v2464_v2, %v2472_v3  ;;  %v2506_v50 = vcombine.high %v2480_v36, %v2488_v40  ;;  %v2489_v4 = vcombine.low %v2464_v2, %v2472_v3  ;;  %v2505_v37 = vcombine.low %v2480_v36, %v2488_v40 }
 0x69e   : >> { %v2504_v29 = vrot.slane %v2490_v59, %v4247_v33  ;;  %v2520_v34 = vrot.slane %v2506_v50, %v4247_v33  ;;  %v2497_v0 = vrot.slane %v2489_v4, %v4247_v33  ;;  %v2513_v57 = vrot.slane %v2505_v37, %v4247_v33 }
 0x6a0   : >> { %v2523_v42 = vcombine.low %v2504_v29, %v2520_v34  ;;  %v2522_v30 = vcombine.high %v2497_v0, %v2513_v57  ;;  %v2524_v35 = vcombine.high %v2504_v29, %v2520_v34  ;;  %v2521_v41 = vcombine.low %v2497_v0, %v2513_v57 }
 0x6a2   : >> { %2530 = vrot.lane.b32.xlu1 %v2523_v42, %s3754_s22  ;;  %2526 = vrot.lane.b32.xlu0 %v2522_v30, %s3755_s26  ;;  %v3358_v42 = vpack.c.bf16 %v4125_v11, %v4123_v10  ;;  %v3367_v30 = vpack.c.bf16 %v4154_v18, %v4149_v17  ;;  %s4624_s22 = scalar_lea.hbm (%p1491_p3), %s4821_s24, %s3109_s3  ;;  %s2840_s26 = scalar_lea.sflag (%p1491_p3), [#allocation4], %s4063_s19 }
 0x6a4   : >> { %3359 = vmatpush3.bf16.msra.mxu1 %v3358_v42 }
 0x6a5   : >> { %3360 = vmatprep.subr.bf16.mxu1 %v4812_v44 }
 0x6a6   : >> { %2534 = vrot.lane.b32.xlu1 %v2524_v35, %s3756_s25  ;;  %v3370_v35 = vpack.c.bf16 %v4164_v20, %v4159_v19  ;;  %s3619_s25 = scalar_lea.vmem (%p1491_p3), %s4627_s29, 256 }
 0x6a7   : > { %p3620_p7 = scmp.ne.s32.totalorder (%p1491_p3), %s4627_s29, %s3619_s25  ;;  %p3627_p4 = scmp.lt.s32.totalorder (%p1491_p3), %s3625_s9, %s3619_s25 }
 0x6a9   : > { %p3621_p12 = pnand (%p1491_p3), %p3620_p7, %p4015_p5  ;;  %p3628_p9 = por (%p1491_p3), %p3627_p4, %p3626_p2 }
 0x6ab   : > { %p3622_p1 = pneg (%p1491_p3), %p3621_p12 }
 0x6ad   : > { %p3629_p0 = pnand (%p1491_p3), %p3628_p9, %p3622_p1 }
 0x714   : >> { %v2531_v43 = vpop.permute.xlu1 %2530  ;;  %v2527_v51 = vpop.permute.xlu0 %2526 }
 0x715   : >> { %v2537_v28 = vsel %vm1730_vm2, %v2521_v41, %v2527_v51 }
 0x716   : >> { %v2538_v2 = vsel %vm2047_vm4, %v2537_v28, %v2531_v43 }
 0x718   : >> { %v2535_v1 = vpop.permute.xlu1 %2534 }
 0x719   : >> { %v2540_v3 = vsel %vm2539_vm5, %v2538_v2, %v2535_v1 }
 0x71a   : >> { %3269 = vmatmul.mubr.msk.f32.vlgmr.msra.gmra.mrb[6].mxu0 %vm709_vm0, %v2540_v3 }
 0x71b   : >> { %3298 = vmatprep.mubr.msk.f32.mxu0 %vm3749_vm1, %v4811_v58  ;;  %v3361_v58 = vpack.c.bf16 %v4129_v13, %v4127_v12 }
 0x71d   : >> { %3362 = vmatpush3.bf16.msra.mxu1 %v3361_v58 }
 0x7ed   : >> { %v2616_v36 = vpop.f32.mrb[6].mxu0 }
 0x7ee   : >> { %v2617_v40 = vadd.f32 %v4121_v9, %v2616_v36  ;;  %v3270_v59 = vpop.f32.mrb[7].mxu0  ;;  %v3373_v36 = vpack.c.bf16 %v4174_v22, %v4169_v21 }
 0x7f0   : >> { %v2620_v50 = vadd.f32 %v2617_v40, %v4424_v32  ;;  %v3364_v32 = vpack.c.bf16 %v4144_v16, %v4139_v15 }
 0x7f2   : >> { %v2621_v4 = vsel %vm709_vm0, %v2620_v50, 0.0  ;;  %3365 = vmatpush3.bf16.msra.mxu0 %v3364_v32 }
 0x7f3   : >> { %2622 = vadd.xlane.f32.xlu0 %v2621_v4  ;;  %3366 = vmatprep.subr.bf16.mxu0 %v4812_v44 }
 0x7f6   : >> { %3368 = vmatpush3.bf16.msra.mxu0 %v3367_v30 }
 0x7f7   : >> { %3369 = vmatprep.subr.bf16.mxu0 %v4812_v44 }
 0x7fa   : >> { %3371 = vmatpush3.bf16.msra.mxu0 %v3370_v35 }
 0x7fb   : >> { %3372 = vmatprep.subr.bf16.mxu0 %v4812_v44 }
 0x7fe   : >> { %3374 = vmatpush3.bf16.msra.mxu0 %v3373_v36 }
 0x880   : >> { %v2623_v37 = vpop.xlane.xlu0 %2622 }
 0x881   : >> { %v2625_v29 = vmul.f32 0.03125, %v2623_v37 }
 0x883   : >> { %v2626_v34 = vsub.f32 %v2620_v50, %v2625_v29 }
 0x885   : >> { %v2627_v0 = vmul.f32 %v2626_v34, %v2626_v34 }
 0x887   : >> { %v2628_v57 = vsel %vm709_vm0, %v2627_v0, 0.0 }
 0x888   : >> { %2629 = vadd.xlane.f32.xlu1 %v2628_v57 }
 0x915   : >> { %v2630_v41 = vpop.xlane.xlu1 %2629 }
 0x916   : >> { %v2631_v43 = vmul.f32 0.03125, %v2630_v41 }
 0x918   : >> { %v2632_v51 = vadd.f32 1e-12, %v2631_v43 }
 0x91a   : >> { %3501 = vrsqrt.f32 %v2632_v51 }
 0x924   : >> { %v3502_v28 = vpop.eup %3501 }
 0x925   : >> { %v2634_v1 = vmul.f32 %v3502_v28, %v2626_v34 }
 0x927   : >> { %v2641_v2 = vmul.f32 %v4189_v24, %v2634_v1 }
 0x929   : >> { %v2648_v3 = vadd.f32 %v4194_v25, %v2641_v2 }
 0x92b   : >> { %3280 = vmatmul.mubr.msk.f32.vlgmr.msra.gmra.mrb[12].mxu1 %vm709_vm0, %v2648_v3 }
 0x9fe   : >> { %v2724_v40 = vpop.f32.mrb[12].mxu1 }
 0x9ff   : >> { %v2725_v59 = vadd.f32 %v4134_v14, %v2724_v40  ;;  %v3281_v44 = vpop.f32.mrb[13].mxu1 }
 0xa01   : >> { %v2728_v50 = vmax.f32 %v2725_v59, 0.0 }
 0xa03   : >> { %3299 = vmatmul.mubr.msk.f32.vlgmr.msra.gmra.mrb[8].mxu0 %vm2735_vm6, %v2728_v50 }
 0xad6   : >> { %v2805_v4 = vpop.f32.mrb[8].mxu0 }
 0xad7   : >> { %v2806_v37 = vadd.f32 %v4179_v23, %v2805_v4  ;;  %v3300_v29 = vpop.f32.mrb[9].mxu0 }
 0xad9   : >> { %v2809_v34 = vadd.f32 %v2806_v37, %v2648_v3 }
 0xadb   : >> { %v2810_v0 = vsel %vm709_vm0, %v2809_v34, 0.0 }
 0xadc   : >> { %2811 = vadd.xlane.f32.xlu0 %v2810_v0 }
 0xb69   : >> { %v2812_v57 = vpop.xlane.xlu0 %2811 }
 0xb6a   : >> { %v2813_v42 = vmul.f32 0.03125, %v2812_v57 }
 0xb6c   : >> { %v2814_v58 = vsub.f32 %v2809_v34, %v2813_v42 }
 0xb6e   : >> { %v2815_v32 = vmul.f32 %v2814_v58, %v2814_v58 }
 0xb70   : >> { %v2816_v30 = vsel %vm709_vm0, %v2815_v32, 0.0 }
 0xb71   : >> { %2817 = vadd.xlane.f32.xlu0 %v2816_v30 }
 0xbfe   : >> { %v2818_v35 = vpop.xlane.xlu0 %2817 }
 0xbff   : >> { %v2819_v41 = vmul.f32 0.03125, %v2818_v35 }
 0xc01   : >> { %v2820_v43 = vadd.f32 1e-12, %v2819_v41 }
 0xc03   : >> { %3503 = vrsqrt.f32 %v2820_v43 }
 0xc0d   : >> { %v3504_v51 = vpop.eup %3503 }
 0xc0e   : >> { %v2822_v28 = vmul.f32 %v3504_v51, %v2814_v58  ;;  %1493 = sbr.rel (!%p1491_p3) target bundleno = 568 (0x238), region = 180 }
 0xc10   : >> { %v2829_v1 = vmul.f32 %v4199_v26, %v2822_v28 }
 0xc12   : >> { %v2836_v2 = vadd.f32 %v4204_v27, %v2829_v1 }
 0xc14   : >> { %2838 = vst.msk [vmem:[%s2837_s0] sm:$0xff] %vm709_vm0, %v2836_v2 }
 0xc15   : > { %3632 = shalt.err (!%p3629_p0)
}
 0xc16   : > { %s3633_s6 = scalar_lea.hbm %s4624_s22, 256  ;;  %s3637_s4 = scalar_lea.hbm %s4821_s24, 512 }
 0xc17   : > { %p3634_p11 = scmp.ne.s32.totalorder %s4624_s22, %s3633_s6  ;;  %p3638_p6 = scmp.lt.u32.totalorder %s4624_s22, %s4821_s24 }
 0xc18   : > { %p3639_p10 = scmp.lt.u32.totalorder %s3637_s4, %s3633_s6  ;;  %p3641_p7 = scmp.lt.u32.totalorder %s3633_s6, %s4624_s22 }
 0xc19   : > { %p3635_p8 = pnand %p3634_p11, %p4015_p5 }
 0xc1a   : > { %p3640_p3 = por %p3639_p10, %p3638_p6 }
 0xc1b   : > { %p3636_p13 = pneg %p3635_p8 }
 0xc1c   : > { %p3642_p12 = por %p3641_p7, %p3640_p3 }
 0xc1e   : > { %p3643_p1 = pnand %p3642_p12, %p3636_p13 }
 0xc20   : > { %3646 = shalt.err (!%p3643_p1)
}
 0xc21   : > { %s3758_s25 = smov 128   ;;  %s3759_s23 = smov 8  }
 0xc22   : > { %3389 = dma.vmem_to_hbm [thread:$0]  (%p4015_p5), %s4627_s29, 256, %s4624_s22, %s2840_s26, %s3758_s25, %s3758_s25, %s3759_s23  }
 0xc23   : > { %s3110_s9 = sshll.u32 %s3882_s1, 10  ;;  %s2874_s6 = sshll.u32 %s4401_s8, 4  ;;  %s4663_s6 = int_to_ptr.vmem [resolvable:$true] %s2874_s6 }
 0xc24   : > { %s4822_s4 = sld [smem:[#allocation39_spill]]  ;;  %s2845_s18 = scalar_lea.sflag [#allocation12], %s4063_s19 }
 0xc25   : > { %s3647_s2 = scalar_lea.vmem %s4663_s6, 1024  ;;  %s3760_s10 = smov [#allocation11]  }
 0xc26   : > { %p3648_p2 = scmp.ne.s32.totalorder %s4663_s6, %s3647_s2  ;;  %s3651_s22 = sshll.u32 %s3760_s10, 4  ;;  %s3652_s22 = int_to_ptr.vmem [resolvable:$false] %s3651_s22 }
 0xc27   : > { %s3653_s1 = scalar_lea.vmem %s3652_s22, 2048  ;;  %p3654_p0 = scmp.lt.s32.totalorder %s4663_s6, %s3652_s22 }
 0xc28   : > { %p3649_p4 = pnand %p3648_p2, %p4015_p5  ;;  %p3655_p11 = scmp.lt.s32.totalorder %s3653_s1, %s3647_s2 }
 0xc2a   : > { %s4661_s5 = scalar_lea.hbm %s4822_s4, %s3110_s9  ;;  %p3650_p9 = pneg %p3649_p4 }
 0xc2b   : > { %p3656_p8 = por %p3655_p11, %p3654_p0 }
 0xc2d   : > { %p3657_p13 = pnand %p3656_p8, %p3650_p9 }
 0xc2f   : > { %3660 = shalt.err (!%p3657_p13)
}
 0xc30   : > { %s3661_s8 = scalar_lea.hbm %s4661_s5, 1024  ;;  %s3665_s10 = scalar_lea.hbm %s4822_s4, 2048 }
 0xc31   : > { %p3662_p6 = scmp.ne.s32.totalorder %s4661_s5, %s3661_s8  ;;  %p3666_p7 = scmp.lt.u32.totalorder %s4661_s5, %s4822_s4 }
 0xc32   : > { %p3667_p12 = scmp.lt.u32.totalorder %s3665_s10, %s3661_s8  ;;  %p3669_p2 = scmp.lt.u32.totalorder %s3661_s8, %s4661_s5 }
 0xc33   : > { %p3663_p10 = pnand %p3662_p6, %p4015_p5 }
 0xc34   : > { %p3668_p1 = por %p3667_p12, %p3666_p7 }
 0xc35   : > { %p3664_p3 = pneg %p3663_p10 }
 0xc36   : > { %p3670_p4 = por %p3669_p2, %p3668_p1 }
 0xc38   : > { %p3671_p9 = pnand %p3670_p4, %p3664_p3 }
 0xc3a   : > { %3674 = shalt.err (!%p3671_p9)
}
 0xc3b   : > { %3390 = dma.vmem_to_hbm [thread:$0]  (%p4015_p5), %s4663_s6, 1024, %s4661_s5, %s2845_s18, %s3758_s25, %s3758_s25, %s3759_s23  }
 0xc3c PF: > { %s4823_s2 = sld [smem:[#allocation18_spill]]  ;;  %s4824_s3 = sld [smem:[#allocation19_spill]] }
 0xc3d   : > { %p4826_p11 = scmp.ge.s32.totalorder %s3729_s21, 2 }
 0xc42   : > { %s2889_s22 = sand.u32 1, %s4823_s2   ;;  %p4825_p0 = scmp.ne.s32.totalorder %s4824_s3, 0 }
 0xc43   : > { %s2890_s1 = scalar_lea.sflag [#allocation4], %s2889_s22 }
 0xc44   : > { %p3408_p8 = pnand %p4826_p11, %p4825_p0 }
 0xc46   : > { %3708 = dma.done.wait (!%p3408_p8), %s2890_s1, 256  }
 0xc47   : > { %3710 = vsyncadd (!%p3408_p8), %s2890_s1, 4294967040  ;;  %s2899_s17 = scalar_lea.sflag [#allocation12], %s2889_s22 }
 0xc48   : > { %3712 = dma.done.wait (!%p3408_p8), %s2899_s17, 1024  }
 0xc49   : > { %3714 = vsyncadd (!%p3408_p8), %s2899_s17, 4294966272  ;;  %p38_p5 = scmp.ge.s32.totalorder %s4001_s7, 4   ;;  %s4827_s0 = smov %s3721_s30 }
 0xc4a   : > { %s4828_s30 = smov %s3725_s20  ;;  %s4829_s20 = smov %s4011_s16 }
 0xc4b   : > { %s4830_s21 = smov %s4001_s7  ;;  %40 = sbr.rel (!%p38_p5) target bundleno = 25 (0x19), region = 191 }
 0xc52   :  { %2904 = vsyncpa [#allocation3], 1 }
 0xc53   :  { %2906 = vsyncpa [#allocation3 + $0x1], 1 }
 0xc54   :  { %2907 = vsyncpa [#allocation6], 1 }
 0xc55   :  { %2908 = vsyncpa [#allocation9], 1 }
 0xc56   :  { %2909 = vsyncpa [#allocation4], 1 }
 0xc57   :  { %2911 = vsyncpa [#allocation4 + $0x1], 1 }
 0xc58   :  { %2912 = vsyncpa [#allocation12], 1 }
 0xc59   :  { %2914 = vsyncpa [#allocation12 + $0x1], 1 }

</bundles_post_ra>
